<compile_context>
chip_gen: v7x
topology: tpu7x:2x2x1
jax: 0.10.0
libtpu: 0.0.40
codegen_flags: <defaults>
</compile_context>

<pallas_src>
import jax
import jax.numpy as jnp
from jax.experimental import pallas as pl
from jax.experimental.pallas import tpu as pltpu

C_OUT = 16
H = W = 32
KH = KW = 3
NTAP = KH * KW            # 9 conv taps
SUB, LANE = 8, 128        # lane-dense tile holding one flattened 32x32 map


def _make_simple_nn_kernel(exp_dtype):
    def kernel(xs_ref, convw_ref, convb_ref, fcw_ref, fcb_ref, out_ref):
        # xs_ref   : (TB, 9, 8, 128) f32 VMEM -- 9 shifted 3x3 windows per sample,
        #                                        each (32,32) map as an (8,128) tile
        # convw_ref: (144,) f32 SMEM           -- conv weights, c-major (c*9+dy*3+dx)
        # convb_ref: (16,)  f32 SMEM
        # fcw_ref  : (2, 16, 8, 128) f32 VMEM  -- fc weight in conv-output layout
        # fcb_ref  : (2,)   f32 SMEM
        # out_ref  : (TB, 128) f32 VMEM        -- sample i's logits in row i, lanes 0..1
        tb = xs_ref.shape[0]

        # Loop-invariant iotas, computed once per grid step.
        lane = jax.lax.broadcasted_iota(jnp.int32, (1, LANE), 1)
        sub_iota = jax.lax.broadcasted_iota(jnp.int32, (tb, 1), 0)

        def sample_body(i, out_acc):
            # 9 shifted tiles for this sample; reused across all 16 channels.
            shifts = [xs_ref[i, t] for t in range(NTAP)]

            # --- Conv2d(1,16,k=3,pad=1): 9 scalar*tile MACs per channel, bias folded ---
            conv = []
            for c in range(C_OUT):
                acc = convb_ref[c] + convw_ref[c * NTAP] * shifts[0]
                for t in range(1, NTAP):
                    acc = acc + convw_ref[c * NTAP + t] * shifts[t]
                conv.append(acc)          # 16 live (8,128) vregs

            # --- Softmax over channels (PyTorch dim=1), fused with the FC contraction ---
            m = conv[0]
            for c in range(1, C_OUT):
                m = jnp.maximum(m, conv[c])

            z = None
            num0 = None
            num1 = None
            for c in range(C_OUT):       # single fused pass: exp + accumulate
                e = jnp.exp((conv[c] - m).astype(exp_dtype)).astype(jnp.float32)
                w0 = fcw_ref[0, c]
                w1 = fcw_ref[1, c]
                if c == 0:
                    z, num0, num1 = e, e * w0, e * w1
                else:
                    z = z + e
                    num0 = num0 + e * w0
                    num1 = num1 + e * w1

            rz = pl.reciprocal(z, approx=True)   # one EUP reciprocal, no per-channel divide
            o0 = jnp.sum(num0 * rz) + fcb_ref[0]
            o1 = jnp.sum(num1 * rz) + fcb_ref[1]

            # Merge this sample's logits into row i of the (TB,128) tile:
            # pure elementwise selects (TB/8 vregs), no masked / dynamic stores.
            row = jnp.where(lane == 0, o0, jnp.where(lane == 1, o1, 0.0))   # (1,128)
            return jnp.where(sub_iota == i, row, out_acc)                   # (TB,128)

        out_tile = jax.lax.fori_loop(
            0, tb, sample_body, jnp.zeros((tb, LANE), jnp.float32))
        out_ref[...] = out_tile          # single full, unmasked store per grid step

    return kernel


def _pick_tb(batch):
    # Multiple of 8, capped at 32; for larger batches keep >=2 grid steps so
    # dimension_semantics=("parallel",) can shard across both v7x TensorCores.
    if batch >= 64:
        return 32
    if batch >= 32:
        return 16
    return 8


def _use_bf16_exp():
    # bf16 EUP exists on v6e/v7x; v5e (and older) keep f32.
    try:
        kind = jax.devices()[0].device_kind.lower()
    except Exception:
        return False
    return ("v6" in kind) or ("v7" in kind)


def simple_nn_forward(x, conv_w, conv_b, fc_w, fc_b, *, tb=None):
    """x: (B, 1, 32, 32) f32 NCHW.  Returns (B, 2) f32 logits."""
    B = x.shape[0]
    if tb is None:
        tb = _pick_tb(B)
    n_steps = -(-B // tb)
    Bp = n_steps * tb
    if Bp != B:
        x = jnp.pad(x, ((0, Bp - B), (0, 0), (0, 0), (0, 0)))

    # Layout plumbing only (no arithmetic): 9 shifted conv windows, each (32,32)
    # map flattened row-major into a lane-dense (8,128) tile.
    xp = jnp.pad(x[:, 0], ((0, 0), (1, 1), (1, 1)))            # (Bp, 34, 34)
    windows = jnp.stack(
        [xp[:, dy:dy + H, dx:dx + W] for dy in range(KH) for dx in range(KW)],
        axis=1)                                                # (Bp, 9, 32, 32)
    windows = windows.reshape(Bp, NTAP, SUB, LANE)             # (Bp, 9, 8, 128)

    convw_flat = conv_w.reshape(C_OUT * NTAP)                  # (144,) c-major
    fcw_r = fc_w.reshape(2, C_OUT, SUB, LANE)                  # matches c*1024+h*32+w flatten

    exp_dtype = jnp.bfloat16 if _use_bf16_exp() else jnp.float32

    flops = Bp * (2 * C_OUT * NTAP * H * W + 8 * C_OUT * H * W)
    transcendentals = Bp * (C_OUT + 1) * H * W
    bytes_accessed = (windows.size + fcw_r.size + Bp * LANE
                      + convw_flat.size + conv_b.size + fc_b.size) * 4

    out_padded = pl.pallas_call(
        _make_simple_nn_kernel(exp_dtype),
        out_shape=jax.ShapeDtypeStruct((Bp, LANE), jnp.float32),
        grid=(n_steps,),
        in_specs=[
            # TB-sample window slab: double-buffered DMA over the batch grid.
            pl.BlockSpec((tb, NTAP, SUB, LANE), lambda b: (b, 0, 0, 0)),
            pl.BlockSpec(memory_space=pltpu.MemorySpace.SMEM),   # conv weights
            pl.BlockSpec(memory_space=pltpu.MemorySpace.SMEM),   # conv bias
            # fc weight: constant index map -> block stays resident in VMEM (~128 KiB);
            # single-buffering it (pl.Buffered(1)) would only save another 128 KiB.
            pl.BlockSpec((2, C_OUT, SUB, LANE), lambda b: (0, 0, 0, 0)),
            pl.BlockSpec(memory_space=pltpu.MemorySpace.SMEM),   # fc bias
        ],
        out_specs=pl.BlockSpec((tb, LANE), lambda b: (b, 0)),    # full (8k,128) tiles
        compiler_params=pltpu.CompilerParams(
            dimension_semantics=("parallel",)),                  # megacore on v7x
        cost_estimate=pl.CostEstimate(flops=flops,
                                      transcendentals=transcendentals,
                                      bytes_accessed=bytes_accessed),
    )(windows, convw_flat, conv_b, fcw_r, fc_b)
    return out_padded[:B, :2]


def _reference(x, conv_w, conv_b, fc_w, fc_b):
    y = jax.lax.conv_general_dilated(
        x, conv_w, window_strides=(1, 1), padding=((1, 1), (1, 1)),
        dimension_numbers=("NCHW", "OIHW", "NCHW"))
    y = y + conv_b[None, :, None, None]
    y = jax.nn.softmax(y, axis=1)
    y = y.reshape(x.shape[0], -1)
    return y @ fc_w.T + fc_b


if __name__ == "__main__":
    key = jax.random.PRNGKey(0)
    k_x, k_cw, k_cb, k_fw, k_fb = jax.random.split(key, 5)

    B = 2
    x = jax.random.normal(k_x, (B, 1, H, W), dtype=jnp.float32)

    # Deterministic parameter init (PyTorch-like uniform fan-in scaling).
    conv_fan_in = 1 * KH * KW
    conv_w = jax.random.uniform(k_cw, (C_OUT, 1, KH, KW), jnp.float32,
                                minval=-1.0, maxval=1.0) / jnp.sqrt(conv_fan_in)
    conv_b = jax.random.uniform(k_cb, (C_OUT,), jnp.float32,
                                minval=-1.0, maxval=1.0) / jnp.sqrt(conv_fan_in)
    fc_fan_in = C_OUT * H * W
    fc_w = jax.random.uniform(k_fw, (2, fc_fan_in), jnp.float32,
                              minval=-1.0, maxval=1.0) / jnp.sqrt(fc_fan_in)
    fc_b = jax.random.uniform(k_fb, (2,), jnp.float32,
                              minval=-1.0, maxval=1.0) / jnp.sqrt(fc_fan_in)

    out = jax.block_until_ready(simple_nn_forward(x, conv_w, conv_b, fc_w, fc_b))
    ref = jax.block_until_ready(_reference(x, conv_w, conv_b, fc_w, fc_b))

    assert out.shape == (B, 2), out.shape
    assert jnp.allclose(out, ref, atol=1e-2, rtol=1e-2), (out, ref)
    print("KERNEL_OK")
</pallas_src>

<mosaic_0001>
module attributes {stable_mosaic.version = 11 : i64} {
  func.func @kernel(%arg0: i32, %arg1: memref<8x9x8x128xf32, #tpu.memory_space<vmem>>, %arg2: memref<144xf32, #tpu.memory_space<smem>>, %arg3: memref<16xf32, #tpu.memory_space<smem>>, %arg4: memref<2x16x8x128xf32, #tpu.memory_space<vmem>>, %arg5: memref<2xf32, #tpu.memory_space<smem>>, %arg6: memref<8x128xf32, #tpu.memory_space<vmem>>) attributes {dimension_semantics = [#tpu.dimension_semantics<parallel>], iteration_bounds = array<i64: 1>, scalar_prefetch = 0 : i64, scratch_operands = 0 : i64, tpu.core_type = #tpu.core_type<tc>, window_params = [{transform_indices = @transform_0, window_bounds = array<i64: 8, 9, 8, 128>}, {transform_indices = @transform_1, window_bounds = array<i64: 144>}, {transform_indices = @transform_2, window_bounds = array<i64: 16>}, {pipeline_mode = #tpu.pipeline_mode<synchronous>, transform_indices = @transform_3, window_bounds = array<i64: 2, 16, 8, 128>}, {transform_indices = @transform_4, window_bounds = array<i64: 2>}, {transform_indices = @transform_5, window_bounds = array<i64: 8, 128>}]} {
    %0 = tpu.iota {dimensions = array<i32: 1>} : vector<1x128xi32>
    %1 = tpu.iota {dimensions = array<i32: 0>} : vector<8x1xi32>
    %cst = arith.constant 0.000000e+00 : f32
    %2 = vector.broadcast %cst : f32 to vector<8x128xf32>
    %c0_i32 = arith.constant 0 : i32
    %c8_i32 = arith.constant 8 : i32
    %3 = arith.addi %c0_i32, %c8_i32 : i32
    %c1_i32 = arith.constant 1 : i32
    %4 = scf.for %arg7 = %c0_i32 to %3 step %c1_i32 iter_args(%arg8 = %2) -> (vector<8x128xf32>)  : i32 {
      %6 = arith.index_cast %arg7 : i32 to index
      %c0_2 = arith.constant 0 : index
      %c0_3 = arith.constant 0 : index
      %c0_4 = arith.constant 0 : index
      %7 = vector.load %arg1[%6, %c0_2, %c0_3, %c0_4] : memref<8x9x8x128xf32, #tpu.memory_space<vmem>>, vector<1x1x8x128xf32>
      %8 = vector.shape_cast %7 : vector<1x1x8x128xf32> to vector<8x128xf32>
      %9 = arith.index_cast %arg7 : i32 to index
      %c1 = arith.constant 1 : index
      %c0_5 = arith.constant 0 : index
      %c0_6 = arith.constant 0 : index
      %10 = vector.load %arg1[%9, %c1, %c0_5, %c0_6] : memref<8x9x8x128xf32, #tpu.memory_space<vmem>>, vector<1x1x8x128xf32>
      %11 = vector.shape_cast %10 : vector<1x1x8x128xf32> to vector<8x128xf32>
      %12 = arith.index_cast %arg7 : i32 to index
      %c2 = arith.constant 2 : index
      %c0_7 = arith.constant 0 : index
      %c0_8 = arith.constant 0 : index
      %13 = vector.load %arg1[%12, %c2, %c0_7, %c0_8] : memref<8x9x8x128xf32, #tpu.memory_space<vmem>>, vector<1x1x8x128xf32>
      %14 = vector.shape_cast %13 : vector<1x1x8x128xf32> to vector<8x128xf32>
      %15 = arith.index_cast %arg7 : i32 to index
      %c3 = arith.constant 3 : index
      %c0_9 = arith.constant 0 : index
      %c0_10 = arith.constant 0 : index
      %16 = vector.load %arg1[%15, %c3, %c0_9, %c0_10] : memref<8x9x8x128xf32, #tpu.memory_space<vmem>>, vector<1x1x8x128xf32>
      %17 = vector.shape_cast %16 : vector<1x1x8x128xf32> to vector<8x128xf32>
      %18 = arith.index_cast %arg7 : i32 to index
      %c4 = arith.constant 4 : index
      %c0_11 = arith.constant 0 : index
      %c0_12 = arith.constant 0 : index
      %19 = vector.load %arg1[%18, %c4, %c0_11, %c0_12] : memref<8x9x8x128xf32, #tpu.memory_space<vmem>>, vector<1x1x8x128xf32>
      %20 = vector.shape_cast %19 : vector<1x1x8x128xf32> to vector<8x128xf32>
      %21 = arith.index_cast %arg7 : i32 to index
      %c5 = arith.constant 5 : index
      %c0_13 = arith.constant 0 : index
      %c0_14 = arith.constant 0 : index
      %22 = vector.load %arg1[%21, %c5, %c0_13, %c0_14] : memref<8x9x8x128xf32, #tpu.memory_space<vmem>>, vector<1x1x8x128xf32>
      %23 = vector.shape_cast %22 : vector<1x1x8x128xf32> to vector<8x128xf32>
      %24 = arith.index_cast %arg7 : i32 to index
      %c6 = arith.constant 6 : index
      %c0_15 = arith.constant 0 : index
      %c0_16 = arith.constant 0 : index
      %25 = vector.load %arg1[%24, %c6, %c0_15, %c0_16] : memref<8x9x8x128xf32, #tpu.memory_space<vmem>>, vector<1x1x8x128xf32>
      %26 = vector.shape_cast %25 : vector<1x1x8x128xf32> to vector<8x128xf32>
      %27 = arith.index_cast %arg7 : i32 to index
      %c7 = arith.constant 7 : index
      %c0_17 = arith.constant 0 : index
      %c0_18 = arith.constant 0 : index
      %28 = vector.load %arg1[%27, %c7, %c0_17, %c0_18] : memref<8x9x8x128xf32, #tpu.memory_space<vmem>>, vector<1x1x8x128xf32>
      %29 = vector.shape_cast %28 : vector<1x1x8x128xf32> to vector<8x128xf32>
      %30 = arith.index_cast %arg7 : i32 to index
      %c8 = arith.constant 8 : index
      %c0_19 = arith.constant 0 : index
      %c0_20 = arith.constant 0 : index
      %31 = vector.load %arg1[%30, %c8, %c0_19, %c0_20] : memref<8x9x8x128xf32, #tpu.memory_space<vmem>>, vector<1x1x8x128xf32>
      %32 = vector.shape_cast %31 : vector<1x1x8x128xf32> to vector<8x128xf32>
      %c0_21 = arith.constant 0 : index
      %33 = memref.load %arg3[%c0_21] : memref<16xf32, #tpu.memory_space<smem>>
      %c0_22 = arith.constant 0 : index
      %34 = memref.load %arg2[%c0_22] : memref<144xf32, #tpu.memory_space<smem>>
      %35 = vector.broadcast %34 : f32 to vector<8x128xf32>
      %36 = arith.mulf %35, %8 : vector<8x128xf32>
      %37 = vector.broadcast %33 : f32 to vector<8x128xf32>
      %38 = arith.addf %37, %36 : vector<8x128xf32>
      %c1_23 = arith.constant 1 : index
      %39 = memref.load %arg2[%c1_23] : memref<144xf32, #tpu.memory_space<smem>>
      %40 = vector.broadcast %39 : f32 to vector<8x128xf32>
      %41 = arith.mulf %40, %11 : vector<8x128xf32>
      %42 = arith.addf %38, %41 : vector<8x128xf32>
      %c2_24 = arith.constant 2 : index
      %43 = memref.load %arg2[%c2_24] : memref<144xf32, #tpu.memory_space<smem>>
      %44 = vector.broadcast %43 : f32 to vector<8x128xf32>
      %45 = arith.mulf %44, %14 : vector<8x128xf32>
      %46 = arith.addf %42, %45 : vector<8x128xf32>
      %c3_25 = arith.constant 3 : index
      %47 = memref.load %arg2[%c3_25] : memref<144xf32, #tpu.memory_space<smem>>
      %48 = vector.broadcast %47 : f32 to vector<8x128xf32>
      %49 = arith.mulf %48, %17 : vector<8x128xf32>
      %50 = arith.addf %46, %49 : vector<8x128xf32>
      %c4_26 = arith.constant 4 : index
      %51 = memref.load %arg2[%c4_26] : memref<144xf32, #tpu.memory_space<smem>>
      %52 = vector.broadcast %51 : f32 to vector<8x128xf32>
      %53 = arith.mulf %52, %20 : vector<8x128xf32>
      %54 = arith.addf %50, %53 : vector<8x128xf32>
      %c5_27 = arith.constant 5 : index
      %55 = memref.load %arg2[%c5_27] : memref<144xf32, #tpu.memory_space<smem>>
      %56 = vector.broadcast %55 : f32 to vector<8x128xf32>
      %57 = arith.mulf %56, %23 : vector<8x128xf32>
      %58 = arith.addf %54, %57 : vector<8x128xf32>
      %c6_28 = arith.constant 6 : index
      %59 = memref.load %arg2[%c6_28] : memref<144xf32, #tpu.memory_space<smem>>
      %60 = vector.broadcast %59 : f32 to vector<8x128xf32>
      %61 = arith.mulf %60, %26 : vector<8x128xf32>
      %62 = arith.addf %58, %61 : vector<8x128xf32>
      %c7_29 = arith.constant 7 : index
      %63 = memref.load %arg2[%c7_29] : memref<144xf32, #tpu.memory_space<smem>>
      %64 = vector.broadcast %63 : f32 to vector<8x128xf32>
      %65 = arith.mulf %64, %29 : vector<8x128xf32>
      %66 = arith.addf %62, %65 : vector<8x128xf32>
      %c8_30 = arith.constant 8 : index
      %67 = memref.load %arg2[%c8_30] : memref<144xf32, #tpu.memory_space<smem>>
      %68 = vector.broadcast %67 : f32 to vector<8x128xf32>
      %69 = arith.mulf %68, %32 : vector<8x128xf32>
      %70 = arith.addf %66, %69 : vector<8x128xf32>
      %c1_31 = arith.constant 1 : index
      %71 = memref.load %arg3[%c1_31] : memref<16xf32, #tpu.memory_space<smem>>
      %c9 = arith.constant 9 : index
      %72 = memref.load %arg2[%c9] : memref<144xf32, #tpu.memory_space<smem>>
      %73 = vector.broadcast %72 : f32 to vector<8x128xf32>
      %74 = arith.mulf %73, %8 : vector<8x128xf32>
      %75 = vector.broadcast %71 : f32 to vector<8x128xf32>
      %76 = arith.addf %75, %74 : vector<8x128xf32>
      %c10 = arith.constant 10 : index
      %77 = memref.load %arg2[%c10] : memref<144xf32, #tpu.memory_space<smem>>
      %78 = vector.broadcast %77 : f32 to vector<8x128xf32>
      %79 = arith.mulf %78, %11 : vector<8x128xf32>
      %80 = arith.addf %76, %79 : vector<8x128xf32>
      %c11 = arith.constant 11 : index
      %81 = memref.load %arg2[%c11] : memref<144xf32, #tpu.memory_space<smem>>
      %82 = vector.broadcast %81 : f32 to vector<8x128xf32>
      %83 = arith.mulf %82, %14 : vector<8x128xf32>
      %84 = arith.addf %80, %83 : vector<8x128xf32>
      %c12 = arith.constant 12 : index
      %85 = memref.load %arg2[%c12] : memref<144xf32, #tpu.memory_space<smem>>
      %86 = vector.broadcast %85 : f32 to vector<8x128xf32>
      %87 = arith.mulf %86, %17 : vector<8x128xf32>
      %88 = arith.addf %84, %87 : vector<8x128xf32>
      %c13 = arith.constant 13 : index
      %89 = memref.load %arg2[%c13] : memref<144xf32, #tpu.memory_space<smem>>
      %90 = vector.broadcast %89 : f32 to vector<8x128xf32>
      %91 = arith.mulf %90, %20 : vector<8x128xf32>
      %92 = arith.addf %88, %91 : vector<8x128xf32>
      %c14 = arith.constant 14 : index
      %93 = memref.load %arg2[%c14] : memref<144xf32, #tpu.memory_space<smem>>
      %94 = vector.broadcast %93 : f32 to vector<8x128xf32>
      %95 = arith.mulf %94, %23 : vector<8x128xf32>
      %96 = arith.addf %92, %95 : vector<8x128xf32>
      %c15 = arith.constant 15 : index
      %97 = memref.load %arg2[%c15] : memref<144xf32, #tpu.memory_space<smem>>
      %98 = vector.broadcast %97 : f32 to vector<8x128xf32>
      %99 = arith.mulf %98, %26 : vector<8x128xf32>
      %100 = arith.addf %96, %99 : vector<8x128xf32>
      %c16 = arith.constant 16 : index
      %101 = memref.load %arg2[%c16] : memref<144xf32, #tpu.memory_space<smem>>
      %102 = vector.broadcast %101 : f32 to vector<8x128xf32>
      %103 = arith.mulf %102, %29 : vector<8x128xf32>
      %104 = arith.addf %100, %103 : vector<8x128xf32>
      %c17 = arith.constant 17 : index
      %105 = memref.load %arg2[%c17] : memref<144xf32, #tpu.memory_space<smem>>
      %106 = vector.broadcast %105 : f32 to vector<8x128xf32>
      %107 = arith.mulf %106, %32 : vector<8x128xf32>
      %108 = arith.addf %104, %107 : vector<8x128xf32>
      %c2_32 = arith.constant 2 : index
      %109 = memref.load %arg3[%c2_32] : memref<16xf32, #tpu.memory_space<smem>>
      %c18 = arith.constant 18 : index
      %110 = memref.load %arg2[%c18] : memref<144xf32, #tpu.memory_space<smem>>
      %111 = vector.broadcast %110 : f32 to vector<8x128xf32>
      %112 = arith.mulf %111, %8 : vector<8x128xf32>
      %113 = vector.broadcast %109 : f32 to vector<8x128xf32>
      %114 = arith.addf %113, %112 : vector<8x128xf32>
      %c19 = arith.constant 19 : index
      %115 = memref.load %arg2[%c19] : memref<144xf32, #tpu.memory_space<smem>>
      %116 = vector.broadcast %115 : f32 to vector<8x128xf32>
      %117 = arith.mulf %116, %11 : vector<8x128xf32>
      %118 = arith.addf %114, %117 : vector<8x128xf32>
      %c20 = arith.constant 20 : index
      %119 = memref.load %arg2[%c20] : memref<144xf32, #tpu.memory_space<smem>>
      %120 = vector.broadcast %119 : f32 to vector<8x128xf32>
      %121 = arith.mulf %120, %14 : vector<8x128xf32>
      %122 = arith.addf %118, %121 : vector<8x128xf32>
      %c21 = arith.constant 21 : index
      %123 = memref.load %arg2[%c21] : memref<144xf32, #tpu.memory_space<smem>>
      %124 = vector.broadcast %123 : f32 to vector<8x128xf32>
      %125 = arith.mulf %124, %17 : vector<8x128xf32>
      %126 = arith.addf %122, %125 : vector<8x128xf32>
      %c22 = arith.constant 22 : index
      %127 = memref.load %arg2[%c22] : memref<144xf32, #tpu.memory_space<smem>>
      %128 = vector.broadcast %127 : f32 to vector<8x128xf32>
      %129 = arith.mulf %128, %20 : vector<8x128xf32>
      %130 = arith.addf %126, %129 : vector<8x128xf32>
      %c23 = arith.constant 23 : index
      %131 = memref.load %arg2[%c23] : memref<144xf32, #tpu.memory_space<smem>>
      %132 = vector.broadcast %131 : f32 to vector<8x128xf32>
      %133 = arith.mulf %132, %23 : vector<8x128xf32>
      %134 = arith.addf %130, %133 : vector<8x128xf32>
      %c24 = arith.constant 24 : index
      %135 = memref.load %arg2[%c24] : memref<144xf32, #tpu.memory_space<smem>>
      %136 = vector.broadcast %135 : f32 to vector<8x128xf32>
      %137 = arith.mulf %136, %26 : vector<8x128xf32>
      %138 = arith.addf %134, %137 : vector<8x128xf32>
      %c25 = arith.constant 25 : index
      %139 = memref.load %arg2[%c25] : memref<144xf32, #tpu.memory_space<smem>>
      %140 = vector.broadcast %139 : f32 to vector<8x128xf32>
      %141 = arith.mulf %140, %29 : vector<8x128xf32>
      %142 = arith.addf %138, %141 : vector<8x128xf32>
      %c26 = arith.constant 26 : index
      %143 = memref.load %arg2[%c26] : memref<144xf32, #tpu.memory_space<smem>>
      %144 = vector.broadcast %143 : f32 to vector<8x128xf32>
      %145 = arith.mulf %144, %32 : vector<8x128xf32>
      %146 = arith.addf %142, %145 : vector<8x128xf32>
      %c3_33 = arith.constant 3 : index
      %147 = memref.load %arg3[%c3_33] : memref<16xf32, #tpu.memory_space<smem>>
      %c27 = arith.constant 27 : index
      %148 = memref.load %arg2[%c27] : memref<144xf32, #tpu.memory_space<smem>>
      %149 = vector.broadcast %148 : f32 to vector<8x128xf32>
      %150 = arith.mulf %149, %8 : vector<8x128xf32>
      %151 = vector.broadcast %147 : f32 to vector<8x128xf32>
      %152 = arith.addf %151, %150 : vector<8x128xf32>
      %c28 = arith.constant 28 : index
      %153 = memref.load %arg2[%c28] : memref<144xf32, #tpu.memory_space<smem>>
      %154 = vector.broadcast %153 : f32 to vector<8x128xf32>
      %155 = arith.mulf %154, %11 : vector<8x128xf32>
      %156 = arith.addf %152, %155 : vector<8x128xf32>
      %c29 = arith.constant 29 : index
      %157 = memref.load %arg2[%c29] : memref<144xf32, #tpu.memory_space<smem>>
      %158 = vector.broadcast %157 : f32 to vector<8x128xf32>
      %159 = arith.mulf %158, %14 : vector<8x128xf32>
      %160 = arith.addf %156, %159 : vector<8x128xf32>
      %c30 = arith.constant 30 : index
      %161 = memref.load %arg2[%c30] : memref<144xf32, #tpu.memory_space<smem>>
      %162 = vector.broadcast %161 : f32 to vector<8x128xf32>
      %163 = arith.mulf %162, %17 : vector<8x128xf32>
      %164 = arith.addf %160, %163 : vector<8x128xf32>
      %c31 = arith.constant 31 : index
      %165 = memref.load %arg2[%c31] : memref<144xf32, #tpu.memory_space<smem>>
      %166 = vector.broadcast %165 : f32 to vector<8x128xf32>
      %167 = arith.mulf %166, %20 : vector<8x128xf32>
      %168 = arith.addf %164, %167 : vector<8x128xf32>
      %c32 = arith.constant 32 : index
      %169 = memref.load %arg2[%c32] : memref<144xf32, #tpu.memory_space<smem>>
      %170 = vector.broadcast %169 : f32 to vector<8x128xf32>
      %171 = arith.mulf %170, %23 : vector<8x128xf32>
      %172 = arith.addf %168, %171 : vector<8x128xf32>
      %c33 = arith.constant 33 : index
      %173 = memref.load %arg2[%c33] : memref<144xf32, #tpu.memory_space<smem>>
      %174 = vector.broadcast %173 : f32 to vector<8x128xf32>
      %175 = arith.mulf %174, %26 : vector<8x128xf32>
      %176 = arith.addf %172, %175 : vector<8x128xf32>
      %c34 = arith.constant 34 : index
      %177 = memref.load %arg2[%c34] : memref<144xf32, #tpu.memory_space<smem>>
      %178 = vector.broadcast %177 : f32 to vector<8x128xf32>
      %179 = arith.mulf %178, %29 : vector<8x128xf32>
      %180 = arith.addf %176, %179 : vector<8x128xf32>
      %c35 = arith.constant 35 : index
      %181 = memref.load %arg2[%c35] : memref<144xf32, #tpu.memory_space<smem>>
      %182 = vector.broadcast %181 : f32 to vector<8x128xf32>
      %183 = arith.mulf %182, %32 : vector<8x128xf32>
      %184 = arith.addf %180, %183 : vector<8x128xf32>
      %c4_34 = arith.constant 4 : index
      %185 = memref.load %arg3[%c4_34] : memref<16xf32, #tpu.memory_space<smem>>
      %c36 = arith.constant 36 : index
      %186 = memref.load %arg2[%c36] : memref<144xf32, #tpu.memory_space<smem>>
      %187 = vector.broadcast %186 : f32 to vector<8x128xf32>
      %188 = arith.mulf %187, %8 : vector<8x128xf32>
      %189 = vector.broadcast %185 : f32 to vector<8x128xf32>
      %190 = arith.addf %189, %188 : vector<8x128xf32>
      %c37 = arith.constant 37 : index
      %191 = memref.load %arg2[%c37] : memref<144xf32, #tpu.memory_space<smem>>
      %192 = vector.broadcast %191 : f32 to vector<8x128xf32>
      %193 = arith.mulf %192, %11 : vector<8x128xf32>
      %194 = arith.addf %190, %193 : vector<8x128xf32>
      %c38 = arith.constant 38 : index
      %195 = memref.load %arg2[%c38] : memref<144xf32, #tpu.memory_space<smem>>
      %196 = vector.broadcast %195 : f32 to vector<8x128xf32>
      %197 = arith.mulf %196, %14 : vector<8x128xf32>
      %198 = arith.addf %194, %197 : vector<8x128xf32>
      %c39 = arith.constant 39 : index
      %199 = memref.load %arg2[%c39] : memref<144xf32, #tpu.memory_space<smem>>
      %200 = vector.broadcast %199 : f32 to vector<8x128xf32>
      %201 = arith.mulf %200, %17 : vector<8x128xf32>
      %202 = arith.addf %198, %201 : vector<8x128xf32>
      %c40 = arith.constant 40 : index
      %203 = memref.load %arg2[%c40] : memref<144xf32, #tpu.memory_space<smem>>
      %204 = vector.broadcast %203 : f32 to vector<8x128xf32>
      %205 = arith.mulf %204, %20 : vector<8x128xf32>
      %206 = arith.addf %202, %205 : vector<8x128xf32>
      %c41 = arith.constant 41 : index
      %207 = memref.load %arg2[%c41] : memref<144xf32, #tpu.memory_space<smem>>
      %208 = vector.broadcast %207 : f32 to vector<8x128xf32>
      %209 = arith.mulf %208, %23 : vector<8x128xf32>
      %210 = arith.addf %206, %209 : vector<8x128xf32>
      %c42 = arith.constant 42 : index
      %211 = memref.load %arg2[%c42] : memref<144xf32, #tpu.memory_space<smem>>
      %212 = vector.broadcast %211 : f32 to vector<8x128xf32>
      %213 = arith.mulf %212, %26 : vector<8x128xf32>
      %214 = arith.addf %210, %213 : vector<8x128xf32>
      %c43 = arith.constant 43 : index
      %215 = memref.load %arg2[%c43] : memref<144xf32, #tpu.memory_space<smem>>
      %216 = vector.broadcast %215 : f32 to vector<8x128xf32>
      %217 = arith.mulf %216, %29 : vector<8x128xf32>
      %218 = arith.addf %214, %217 : vector<8x128xf32>
      %c44 = arith.constant 44 : index
      %219 = memref.load %arg2[%c44] : memref<144xf32, #tpu.memory_space<smem>>
      %220 = vector.broadcast %219 : f32 to vector<8x128xf32>
      %221 = arith.mulf %220, %32 : vector<8x128xf32>
      %222 = arith.addf %218, %221 : vector<8x128xf32>
      %c5_35 = arith.constant 5 : index
      %223 = memref.load %arg3[%c5_35] : memref<16xf32, #tpu.memory_space<smem>>
      %c45 = arith.constant 45 : index
      %224 = memref.load %arg2[%c45] : memref<144xf32, #tpu.memory_space<smem>>
      %225 = vector.broadcast %224 : f32 to vector<8x128xf32>
      %226 = arith.mulf %225, %8 : vector<8x128xf32>
      %227 = vector.broadcast %223 : f32 to vector<8x128xf32>
      %228 = arith.addf %227, %226 : vector<8x128xf32>
      %c46 = arith.constant 46 : index
      %229 = memref.load %arg2[%c46] : memref<144xf32, #tpu.memory_space<smem>>
      %230 = vector.broadcast %229 : f32 to vector<8x128xf32>
      %231 = arith.mulf %230, %11 : vector<8x128xf32>
      %232 = arith.addf %228, %231 : vector<8x128xf32>
      %c47 = arith.constant 47 : index
      %233 = memref.load %arg2[%c47] : memref<144xf32, #tpu.memory_space<smem>>
      %234 = vector.broadcast %233 : f32 to vector<8x128xf32>
      %235 = arith.mulf %234, %14 : vector<8x128xf32>
      %236 = arith.addf %232, %235 : vector<8x128xf32>
      %c48 = arith.constant 48 : index
      %237 = memref.load %arg2[%c48] : memref<144xf32, #tpu.memory_space<smem>>
      %238 = vector.broadcast %237 : f32 to vector<8x128xf32>
      %239 = arith.mulf %238, %17 : vector<8x128xf32>
      %240 = arith.addf %236, %239 : vector<8x128xf32>
      %c49 = arith.constant 49 : index
      %241 = memref.load %arg2[%c49] : memref<144xf32, #tpu.memory_space<smem>>
      %242 = vector.broadcast %241 : f32 to vector<8x128xf32>
      %243 = arith.mulf %242, %20 : vector<8x128xf32>
      %244 = arith.addf %240, %243 : vector<8x128xf32>
      %c50 = arith.constant 50 : index
      %245 = memref.load %arg2[%c50] : memref<144xf32, #tpu.memory_space<smem>>
      %246 = vector.broadcast %245 : f32 to vector<8x128xf32>
      %247 = arith.mulf %246, %23 : vector<8x128xf32>
      %248 = arith.addf %244, %247 : vector<8x128xf32>
      %c51 = arith.constant 51 : index
      %249 = memref.load %arg2[%c51] : memref<144xf32, #tpu.memory_space<smem>>
      %250 = vector.broadcast %249 : f32 to vector<8x128xf32>
      %251 = arith.mulf %250, %26 : vector<8x128xf32>
      %252 = arith.addf %248, %251 : vector<8x128xf32>
      %c52 = arith.constant 52 : index
      %253 = memref.load %arg2[%c52] : memref<144xf32, #tpu.memory_space<smem>>
      %254 = vector.broadcast %253 : f32 to vector<8x128xf32>
      %255 = arith.mulf %254, %29 : vector<8x128xf32>
      %256 = arith.addf %252, %255 : vector<8x128xf32>
      %c53 = arith.constant 53 : index
      %257 = memref.load %arg2[%c53] : memref<144xf32, #tpu.memory_space<smem>>
      %258 = vector.broadcast %257 : f32 to vector<8x128xf32>
      %259 = arith.mulf %258, %32 : vector<8x128xf32>
      %260 = arith.addf %256, %259 : vector<8x128xf32>
      %c6_36 = arith.constant 6 : index
      %261 = memref.load %arg3[%c6_36] : memref<16xf32, #tpu.memory_space<smem>>
      %c54 = arith.constant 54 : index
      %262 = memref.load %arg2[%c54] : memref<144xf32, #tpu.memory_space<smem>>
      %263 = vector.broadcast %262 : f32 to vector<8x128xf32>
      %264 = arith.mulf %263, %8 : vector<8x128xf32>
      %265 = vector.broadcast %261 : f32 to vector<8x128xf32>
      %266 = arith.addf %265, %264 : vector<8x128xf32>
      %c55 = arith.constant 55 : index
      %267 = memref.load %arg2[%c55] : memref<144xf32, #tpu.memory_space<smem>>
      %268 = vector.broadcast %267 : f32 to vector<8x128xf32>
      %269 = arith.mulf %268, %11 : vector<8x128xf32>
      %270 = arith.addf %266, %269 : vector<8x128xf32>
      %c56 = arith.constant 56 : index
      %271 = memref.load %arg2[%c56] : memref<144xf32, #tpu.memory_space<smem>>
      %272 = vector.broadcast %271 : f32 to vector<8x128xf32>
      %273 = arith.mulf %272, %14 : vector<8x128xf32>
      %274 = arith.addf %270, %273 : vector<8x128xf32>
      %c57 = arith.constant 57 : index
      %275 = memref.load %arg2[%c57] : memref<144xf32, #tpu.memory_space<smem>>
      %276 = vector.broadcast %275 : f32 to vector<8x128xf32>
      %277 = arith.mulf %276, %17 : vector<8x128xf32>
      %278 = arith.addf %274, %277 : vector<8x128xf32>
      %c58 = arith.constant 58 : index
      %279 = memref.load %arg2[%c58] : memref<144xf32, #tpu.memory_space<smem>>
      %280 = vector.broadcast %279 : f32 to vector<8x128xf32>
      %281 = arith.mulf %280, %20 : vector<8x128xf32>
      %282 = arith.addf %278, %281 : vector<8x128xf32>
      %c59 = arith.constant 59 : index
      %283 = memref.load %arg2[%c59] : memref<144xf32, #tpu.memory_space<smem>>
      %284 = vector.broadcast %283 : f32 to vector<8x128xf32>
      %285 = arith.mulf %284, %23 : vector<8x128xf32>
      %286 = arith.addf %282, %285 : vector<8x128xf32>
      %c60 = arith.constant 60 : index
      %287 = memref.load %arg2[%c60] : memref<144xf32, #tpu.memory_space<smem>>
      %288 = vector.broadcast %287 : f32 to vector<8x128xf32>
      %289 = arith.mulf %288, %26 : vector<8x128xf32>
      %290 = arith.addf %286, %289 : vector<8x128xf32>
      %c61 = arith.constant 61 : index
      %291 = memref.load %arg2[%c61] : memref<144xf32, #tpu.memory_space<smem>>
      %292 = vector.broadcast %291 : f32 to vector<8x128xf32>
      %293 = arith.mulf %292, %29 : vector<8x128xf32>
      %294 = arith.addf %290, %293 : vector<8x128xf32>
      %c62 = arith.constant 62 : index
      %295 = memref.load %arg2[%c62] : memref<144xf32, #tpu.memory_space<smem>>
      %296 = vector.broadcast %295 : f32 to vector<8x128xf32>
      %297 = arith.mulf %296, %32 : vector<8x128xf32>
      %298 = arith.addf %294, %297 : vector<8x128xf32>
      %c7_37 = arith.constant 7 : index
      %299 = memref.load %arg3[%c7_37] : memref<16xf32, #tpu.memory_space<smem>>
      %c63 = arith.constant 63 : index
      %300 = memref.load %arg2[%c63] : memref<144xf32, #tpu.memory_space<smem>>
      %301 = vector.broadcast %300 : f32 to vector<8x128xf32>
      %302 = arith.mulf %301, %8 : vector<8x128xf32>
      %303 = vector.broadcast %299 : f32 to vector<8x128xf32>
      %304 = arith.addf %303, %302 : vector<8x128xf32>
      %c64 = arith.constant 64 : index
      %305 = memref.load %arg2[%c64] : memref<144xf32, #tpu.memory_space<smem>>
      %306 = vector.broadcast %305 : f32 to vector<8x128xf32>
      %307 = arith.mulf %306, %11 : vector<8x128xf32>
      %308 = arith.addf %304, %307 : vector<8x128xf32>
      %c65 = arith.constant 65 : index
      %309 = memref.load %arg2[%c65] : memref<144xf32, #tpu.memory_space<smem>>
      %310 = vector.broadcast %309 : f32 to vector<8x128xf32>
      %311 = arith.mulf %310, %14 : vector<8x128xf32>
      %312 = arith.addf %308, %311 : vector<8x128xf32>
      %c66 = arith.constant 66 : index
      %313 = memref.load %arg2[%c66] : memref<144xf32, #tpu.memory_space<smem>>
      %314 = vector.broadcast %313 : f32 to vector<8x128xf32>
      %315 = arith.mulf %314, %17 : vector<8x128xf32>
      %316 = arith.addf %312, %315 : vector<8x128xf32>
      %c67 = arith.constant 67 : index
      %317 = memref.load %arg2[%c67] : memref<144xf32, #tpu.memory_space<smem>>
      %318 = vector.broadcast %317 : f32 to vector<8x128xf32>
      %319 = arith.mulf %318, %20 : vector<8x128xf32>
      %320 = arith.addf %316, %319 : vector<8x128xf32>
      %c68 = arith.constant 68 : index
      %321 = memref.load %arg2[%c68] : memref<144xf32, #tpu.memory_space<smem>>
      %322 = vector.broadcast %321 : f32 to vector<8x128xf32>
      %323 = arith.mulf %322, %23 : vector<8x128xf32>
      %324 = arith.addf %320, %323 : vector<8x128xf32>
      %c69 = arith.constant 69 : index
      %325 = memref.load %arg2[%c69] : memref<144xf32, #tpu.memory_space<smem>>
      %326 = vector.broadcast %325 : f32 to vector<8x128xf32>
      %327 = arith.mulf %326, %26 : vector<8x128xf32>
      %328 = arith.addf %324, %327 : vector<8x128xf32>
      %c70 = arith.constant 70 : index
      %329 = memref.load %arg2[%c70] : memref<144xf32, #tpu.memory_space<smem>>
      %330 = vector.broadcast %329 : f32 to vector<8x128xf32>
      %331 = arith.mulf %330, %29 : vector<8x128xf32>
      %332 = arith.addf %328, %331 : vector<8x128xf32>
      %c71 = arith.constant 71 : index
      %333 = memref.load %arg2[%c71] : memref<144xf32, #tpu.memory_space<smem>>
      %334 = vector.broadcast %333 : f32 to vector<8x128xf32>
      %335 = arith.mulf %334, %32 : vector<8x128xf32>
      %336 = arith.addf %332, %335 : vector<8x128xf32>
      %c8_38 = arith.constant 8 : index
      %337 = memref.load %arg3[%c8_38] : memref<16xf32, #tpu.memory_space<smem>>
      %c72 = arith.constant 72 : index
      %338 = memref.load %arg2[%c72] : memref<144xf32, #tpu.memory_space<smem>>
      %339 = vector.broadcast %338 : f32 to vector<8x128xf32>
      %340 = arith.mulf %339, %8 : vector<8x128xf32>
      %341 = vector.broadcast %337 : f32 to vector<8x128xf32>
      %342 = arith.addf %341, %340 : vector<8x128xf32>
      %c73 = arith.constant 73 : index
      %343 = memref.load %arg2[%c73] : memref<144xf32, #tpu.memory_space<smem>>
      %344 = vector.broadcast %343 : f32 to vector<8x128xf32>
      %345 = arith.mulf %344, %11 : vector<8x128xf32>
      %346 = arith.addf %342, %345 : vector<8x128xf32>
      %c74 = arith.constant 74 : index
      %347 = memref.load %arg2[%c74] : memref<144xf32, #tpu.memory_space<smem>>
      %348 = vector.broadcast %347 : f32 to vector<8x128xf32>
      %349 = arith.mulf %348, %14 : vector<8x128xf32>
      %350 = arith.addf %346, %349 : vector<8x128xf32>
      %c75 = arith.constant 75 : index
      %351 = memref.load %arg2[%c75] : memref<144xf32, #tpu.memory_space<smem>>
      %352 = vector.broadcast %351 : f32 to vector<8x128xf32>
      %353 = arith.mulf %352, %17 : vector<8x128xf32>
      %354 = arith.addf %350, %353 : vector<8x128xf32>
      %c76 = arith.constant 76 : index
      %355 = memref.load %arg2[%c76] : memref<144xf32, #tpu.memory_space<smem>>
      %356 = vector.broadcast %355 : f32 to vector<8x128xf32>
      %357 = arith.mulf %356, %20 : vector<8x128xf32>
      %358 = arith.addf %354, %357 : vector<8x128xf32>
      %c77 = arith.constant 77 : index
      %359 = memref.load %arg2[%c77] : memref<144xf32, #tpu.memory_space<smem>>
      %360 = vector.broadcast %359 : f32 to vector<8x128xf32>
      %361 = arith.mulf %360, %23 : vector<8x128xf32>
      %362 = arith.addf %358, %361 : vector<8x128xf32>
      %c78 = arith.constant 78 : index
      %363 = memref.load %arg2[%c78] : memref<144xf32, #tpu.memory_space<smem>>
      %364 = vector.broadcast %363 : f32 to vector<8x128xf32>
      %365 = arith.mulf %364, %26 : vector<8x128xf32>
      %366 = arith.addf %362, %365 : vector<8x128xf32>
      %c79 = arith.constant 79 : index
      %367 = memref.load %arg2[%c79] : memref<144xf32, #tpu.memory_space<smem>>
      %368 = vector.broadcast %367 : f32 to vector<8x128xf32>
      %369 = arith.mulf %368, %29 : vector<8x128xf32>
      %370 = arith.addf %366, %369 : vector<8x128xf32>
      %c80 = arith.constant 80 : index
      %371 = memref.load %arg2[%c80] : memref<144xf32, #tpu.memory_space<smem>>
      %372 = vector.broadcast %371 : f32 to vector<8x128xf32>
      %373 = arith.mulf %372, %32 : vector<8x128xf32>
      %374 = arith.addf %370, %373 : vector<8x128xf32>
      %c9_39 = arith.constant 9 : index
      %375 = memref.load %arg3[%c9_39] : memref<16xf32, #tpu.memory_space<smem>>
      %c81 = arith.constant 81 : index
      %376 = memref.load %arg2[%c81] : memref<144xf32, #tpu.memory_space<smem>>
      %377 = vector.broadcast %376 : f32 to vector<8x128xf32>
      %378 = arith.mulf %377, %8 : vector<8x128xf32>
      %379 = vector.broadcast %375 : f32 to vector<8x128xf32>
      %380 = arith.addf %379, %378 : vector<8x128xf32>
      %c82 = arith.constant 82 : index
      %381 = memref.load %arg2[%c82] : memref<144xf32, #tpu.memory_space<smem>>
      %382 = vector.broadcast %381 : f32 to vector<8x128xf32>
      %383 = arith.mulf %382, %11 : vector<8x128xf32>
      %384 = arith.addf %380, %383 : vector<8x128xf32>
      %c83 = arith.constant 83 : index
      %385 = memref.load %arg2[%c83] : memref<144xf32, #tpu.memory_space<smem>>
      %386 = vector.broadcast %385 : f32 to vector<8x128xf32>
      %387 = arith.mulf %386, %14 : vector<8x128xf32>
      %388 = arith.addf %384, %387 : vector<8x128xf32>
      %c84 = arith.constant 84 : index
      %389 = memref.load %arg2[%c84] : memref<144xf32, #tpu.memory_space<smem>>
      %390 = vector.broadcast %389 : f32 to vector<8x128xf32>
      %391 = arith.mulf %390, %17 : vector<8x128xf32>
      %392 = arith.addf %388, %391 : vector<8x128xf32>
      %c85 = arith.constant 85 : index
      %393 = memref.load %arg2[%c85] : memref<144xf32, #tpu.memory_space<smem>>
      %394 = vector.broadcast %393 : f32 to vector<8x128xf32>
      %395 = arith.mulf %394, %20 : vector<8x128xf32>
      %396 = arith.addf %392, %395 : vector<8x128xf32>
      %c86 = arith.constant 86 : index
      %397 = memref.load %arg2[%c86] : memref<144xf32, #tpu.memory_space<smem>>
      %398 = vector.broadcast %397 : f32 to vector<8x128xf32>
      %399 = arith.mulf %398, %23 : vector<8x128xf32>
      %400 = arith.addf %396, %399 : vector<8x128xf32>
      %c87 = arith.constant 87 : index
      %401 = memref.load %arg2[%c87] : memref<144xf32, #tpu.memory_space<smem>>
      %402 = vector.broadcast %401 : f32 to vector<8x128xf32>
      %403 = arith.mulf %402, %26 : vector<8x128xf32>
      %404 = arith.addf %400, %403 : vector<8x128xf32>
      %c88 = arith.constant 88 : index
      %405 = memref.load %arg2[%c88] : memref<144xf32, #tpu.memory_space<smem>>
      %406 = vector.broadcast %405 : f32 to vector<8x128xf32>
      %407 = arith.mulf %406, %29 : vector<8x128xf32>
      %408 = arith.addf %404, %407 : vector<8x128xf32>
      %c89 = arith.constant 89 : index
      %409 = memref.load %arg2[%c89] : memref<144xf32, #tpu.memory_space<smem>>
      %410 = vector.broadcast %409 : f32 to vector<8x128xf32>
      %411 = arith.mulf %410, %32 : vector<8x128xf32>
      %412 = arith.addf %408, %411 : vector<8x128xf32>
      %c10_40 = arith.constant 10 : index
      %413 = memref.load %arg3[%c10_40] : memref<16xf32, #tpu.memory_space<smem>>
      %c90 = arith.constant 90 : index
      %414 = memref.load %arg2[%c90] : memref<144xf32, #tpu.memory_space<smem>>
      %415 = vector.broadcast %414 : f32 to vector<8x128xf32>
      %416 = arith.mulf %415, %8 : vector<8x128xf32>
      %417 = vector.broadcast %413 : f32 to vector<8x128xf32>
      %418 = arith.addf %417, %416 : vector<8x128xf32>
      %c91 = arith.constant 91 : index
      %419 = memref.load %arg2[%c91] : memref<144xf32, #tpu.memory_space<smem>>
      %420 = vector.broadcast %419 : f32 to vector<8x128xf32>
      %421 = arith.mulf %420, %11 : vector<8x128xf32>
      %422 = arith.addf %418, %421 : vector<8x128xf32>
      %c92 = arith.constant 92 : index
      %423 = memref.load %arg2[%c92] : memref<144xf32, #tpu.memory_space<smem>>
      %424 = vector.broadcast %423 : f32 to vector<8x128xf32>
      %425 = arith.mulf %424, %14 : vector<8x128xf32>
      %426 = arith.addf %422, %425 : vector<8x128xf32>
      %c93 = arith.constant 93 : index
      %427 = memref.load %arg2[%c93] : memref<144xf32, #tpu.memory_space<smem>>
      %428 = vector.broadcast %427 : f32 to vector<8x128xf32>
      %429 = arith.mulf %428, %17 : vector<8x128xf32>
      %430 = arith.addf %426, %429 : vector<8x128xf32>
      %c94 = arith.constant 94 : index
      %431 = memref.load %arg2[%c94] : memref<144xf32, #tpu.memory_space<smem>>
      %432 = vector.broadcast %431 : f32 to vector<8x128xf32>
      %433 = arith.mulf %432, %20 : vector<8x128xf32>
      %434 = arith.addf %430, %433 : vector<8x128xf32>
      %c95 = arith.constant 95 : index
      %435 = memref.load %arg2[%c95] : memref<144xf32, #tpu.memory_space<smem>>
      %436 = vector.broadcast %435 : f32 to vector<8x128xf32>
      %437 = arith.mulf %436, %23 : vector<8x128xf32>
      %438 = arith.addf %434, %437 : vector<8x128xf32>
      %c96 = arith.constant 96 : index
      %439 = memref.load %arg2[%c96] : memref<144xf32, #tpu.memory_space<smem>>
      %440 = vector.broadcast %439 : f32 to vector<8x128xf32>
      %441 = arith.mulf %440, %26 : vector<8x128xf32>
      %442 = arith.addf %438, %441 : vector<8x128xf32>
      %c97 = arith.constant 97 : index
      %443 = memref.load %arg2[%c97] : memref<144xf32, #tpu.memory_space<smem>>
      %444 = vector.broadcast %443 : f32 to vector<8x128xf32>
      %445 = arith.mulf %444, %29 : vector<8x128xf32>
      %446 = arith.addf %442, %445 : vector<8x128xf32>
      %c98 = arith.constant 98 : index
      %447 = memref.load %arg2[%c98] : memref<144xf32, #tpu.memory_space<smem>>
      %448 = vector.broadcast %447 : f32 to vector<8x128xf32>
      %449 = arith.mulf %448, %32 : vector<8x128xf32>
      %450 = arith.addf %446, %449 : vector<8x128xf32>
      %c11_41 = arith.constant 11 : index
      %451 = memref.load %arg3[%c11_41] : memref<16xf32, #tpu.memory_space<smem>>
      %c99 = arith.constant 99 : index
      %452 = memref.load %arg2[%c99] : memref<144xf32, #tpu.memory_space<smem>>
      %453 = vector.broadcast %452 : f32 to vector<8x128xf32>
      %454 = arith.mulf %453, %8 : vector<8x128xf32>
      %455 = vector.broadcast %451 : f32 to vector<8x128xf32>
      %456 = arith.addf %455, %454 : vector<8x128xf32>
      %c100 = arith.constant 100 : index
      %457 = memref.load %arg2[%c100] : memref<144xf32, #tpu.memory_space<smem>>
      %458 = vector.broadcast %457 : f32 to vector<8x128xf32>
      %459 = arith.mulf %458, %11 : vector<8x128xf32>
      %460 = arith.addf %456, %459 : vector<8x128xf32>
      %c101 = arith.constant 101 : index
      %461 = memref.load %arg2[%c101] : memref<144xf32, #tpu.memory_space<smem>>
      %462 = vector.broadcast %461 : f32 to vector<8x128xf32>
      %463 = arith.mulf %462, %14 : vector<8x128xf32>
      %464 = arith.addf %460, %463 : vector<8x128xf32>
      %c102 = arith.constant 102 : index
      %465 = memref.load %arg2[%c102] : memref<144xf32, #tpu.memory_space<smem>>
      %466 = vector.broadcast %465 : f32 to vector<8x128xf32>
      %467 = arith.mulf %466, %17 : vector<8x128xf32>
      %468 = arith.addf %464, %467 : vector<8x128xf32>
      %c103 = arith.constant 103 : index
      %469 = memref.load %arg2[%c103] : memref<144xf32, #tpu.memory_space<smem>>
      %470 = vector.broadcast %469 : f32 to vector<8x128xf32>
      %471 = arith.mulf %470, %20 : vector<8x128xf32>
      %472 = arith.addf %468, %471 : vector<8x128xf32>
      %c104 = arith.constant 104 : index
      %473 = memref.load %arg2[%c104] : memref<144xf32, #tpu.memory_space<smem>>
      %474 = vector.broadcast %473 : f32 to vector<8x128xf32>
      %475 = arith.mulf %474, %23 : vector<8x128xf32>
      %476 = arith.addf %472, %475 : vector<8x128xf32>
      %c105 = arith.constant 105 : index
      %477 = memref.load %arg2[%c105] : memref<144xf32, #tpu.memory_space<smem>>
      %478 = vector.broadcast %477 : f32 to vector<8x128xf32>
      %479 = arith.mulf %478, %26 : vector<8x128xf32>
      %480 = arith.addf %476, %479 : vector<8x128xf32>
      %c106 = arith.constant 106 : index
      %481 = memref.load %arg2[%c106] : memref<144xf32, #tpu.memory_space<smem>>
      %482 = vector.broadcast %481 : f32 to vector<8x128xf32>
      %483 = arith.mulf %482, %29 : vector<8x128xf32>
      %484 = arith.addf %480, %483 : vector<8x128xf32>
      %c107 = arith.constant 107 : index
      %485 = memref.load %arg2[%c107] : memref<144xf32, #tpu.memory_space<smem>>
      %486 = vector.broadcast %485 : f32 to vector<8x128xf32>
      %487 = arith.mulf %486, %32 : vector<8x128xf32>
      %488 = arith.addf %484, %487 : vector<8x128xf32>
      %c12_42 = arith.constant 12 : index
      %489 = memref.load %arg3[%c12_42] : memref<16xf32, #tpu.memory_space<smem>>
      %c108 = arith.constant 108 : index
      %490 = memref.load %arg2[%c108] : memref<144xf32, #tpu.memory_space<smem>>
      %491 = vector.broadcast %490 : f32 to vector<8x128xf32>
      %492 = arith.mulf %491, %8 : vector<8x128xf32>
      %493 = vector.broadcast %489 : f32 to vector<8x128xf32>
      %494 = arith.addf %493, %492 : vector<8x128xf32>
      %c109 = arith.constant 109 : index
      %495 = memref.load %arg2[%c109] : memref<144xf32, #tpu.memory_space<smem>>
      %496 = vector.broadcast %495 : f32 to vector<8x128xf32>
      %497 = arith.mulf %496, %11 : vector<8x128xf32>
      %498 = arith.addf %494, %497 : vector<8x128xf32>
      %c110 = arith.constant 110 : index
      %499 = memref.load %arg2[%c110] : memref<144xf32, #tpu.memory_space<smem>>
      %500 = vector.broadcast %499 : f32 to vector<8x128xf32>
      %501 = arith.mulf %500, %14 : vector<8x128xf32>
      %502 = arith.addf %498, %501 : vector<8x128xf32>
      %c111 = arith.constant 111 : index
      %503 = memref.load %arg2[%c111] : memref<144xf32, #tpu.memory_space<smem>>
      %504 = vector.broadcast %503 : f32 to vector<8x128xf32>
      %505 = arith.mulf %504, %17 : vector<8x128xf32>
      %506 = arith.addf %502, %505 : vector<8x128xf32>
      %c112 = arith.constant 112 : index
      %507 = memref.load %arg2[%c112] : memref<144xf32, #tpu.memory_space<smem>>
      %508 = vector.broadcast %507 : f32 to vector<8x128xf32>
      %509 = arith.mulf %508, %20 : vector<8x128xf32>
      %510 = arith.addf %506, %509 : vector<8x128xf32>
      %c113 = arith.constant 113 : index
      %511 = memref.load %arg2[%c113] : memref<144xf32, #tpu.memory_space<smem>>
      %512 = vector.broadcast %511 : f32 to vector<8x128xf32>
      %513 = arith.mulf %512, %23 : vector<8x128xf32>
      %514 = arith.addf %510, %513 : vector<8x128xf32>
      %c114 = arith.constant 114 : index
      %515 = memref.load %arg2[%c114] : memref<144xf32, #tpu.memory_space<smem>>
      %516 = vector.broadcast %515 : f32 to vector<8x128xf32>
      %517 = arith.mulf %516, %26 : vector<8x128xf32>
      %518 = arith.addf %514, %517 : vector<8x128xf32>
      %c115 = arith.constant 115 : index
      %519 = memref.load %arg2[%c115] : memref<144xf32, #tpu.memory_space<smem>>
      %520 = vector.broadcast %519 : f32 to vector<8x128xf32>
      %521 = arith.mulf %520, %29 : vector<8x128xf32>
      %522 = arith.addf %518, %521 : vector<8x128xf32>
      %c116 = arith.constant 116 : index
      %523 = memref.load %arg2[%c116] : memref<144xf32, #tpu.memory_space<smem>>
      %524 = vector.broadcast %523 : f32 to vector<8x128xf32>
      %525 = arith.mulf %524, %32 : vector<8x128xf32>
      %526 = arith.addf %522, %525 : vector<8x128xf32>
      %c13_43 = arith.constant 13 : index
      %527 = memref.load %arg3[%c13_43] : memref<16xf32, #tpu.memory_space<smem>>
      %c117 = arith.constant 117 : index
      %528 = memref.load %arg2[%c117] : memref<144xf32, #tpu.memory_space<smem>>
      %529 = vector.broadcast %528 : f32 to vector<8x128xf32>
      %530 = arith.mulf %529, %8 : vector<8x128xf32>
      %531 = vector.broadcast %527 : f32 to vector<8x128xf32>
      %532 = arith.addf %531, %530 : vector<8x128xf32>
      %c118 = arith.constant 118 : index
      %533 = memref.load %arg2[%c118] : memref<144xf32, #tpu.memory_space<smem>>
      %534 = vector.broadcast %533 : f32 to vector<8x128xf32>
      %535 = arith.mulf %534, %11 : vector<8x128xf32>
      %536 = arith.addf %532, %535 : vector<8x128xf32>
      %c119 = arith.constant 119 : index
      %537 = memref.load %arg2[%c119] : memref<144xf32, #tpu.memory_space<smem>>
      %538 = vector.broadcast %537 : f32 to vector<8x128xf32>
      %539 = arith.mulf %538, %14 : vector<8x128xf32>
      %540 = arith.addf %536, %539 : vector<8x128xf32>
      %c120 = arith.constant 120 : index
      %541 = memref.load %arg2[%c120] : memref<144xf32, #tpu.memory_space<smem>>
      %542 = vector.broadcast %541 : f32 to vector<8x128xf32>
      %543 = arith.mulf %542, %17 : vector<8x128xf32>
      %544 = arith.addf %540, %543 : vector<8x128xf32>
      %c121 = arith.constant 121 : index
      %545 = memref.load %arg2[%c121] : memref<144xf32, #tpu.memory_space<smem>>
      %546 = vector.broadcast %545 : f32 to vector<8x128xf32>
      %547 = arith.mulf %546, %20 : vector<8x128xf32>
      %548 = arith.addf %544, %547 : vector<8x128xf32>
      %c122 = arith.constant 122 : index
      %549 = memref.load %arg2[%c122] : memref<144xf32, #tpu.memory_space<smem>>
      %550 = vector.broadcast %549 : f32 to vector<8x128xf32>
      %551 = arith.mulf %550, %23 : vector<8x128xf32>
      %552 = arith.addf %548, %551 : vector<8x128xf32>
      %c123 = arith.constant 123 : index
      %553 = memref.load %arg2[%c123] : memref<144xf32, #tpu.memory_space<smem>>
      %554 = vector.broadcast %553 : f32 to vector<8x128xf32>
      %555 = arith.mulf %554, %26 : vector<8x128xf32>
      %556 = arith.addf %552, %555 : vector<8x128xf32>
      %c124 = arith.constant 124 : index
      %557 = memref.load %arg2[%c124] : memref<144xf32, #tpu.memory_space<smem>>
      %558 = vector.broadcast %557 : f32 to vector<8x128xf32>
      %559 = arith.mulf %558, %29 : vector<8x128xf32>
      %560 = arith.addf %556, %559 : vector<8x128xf32>
      %c125 = arith.constant 125 : index
      %561 = memref.load %arg2[%c125] : memref<144xf32, #tpu.memory_space<smem>>
      %562 = vector.broadcast %561 : f32 to vector<8x128xf32>
      %563 = arith.mulf %562, %32 : vector<8x128xf32>
      %564 = arith.addf %560, %563 : vector<8x128xf32>
      %c14_44 = arith.constant 14 : index
      %565 = memref.load %arg3[%c14_44] : memref<16xf32, #tpu.memory_space<smem>>
      %c126 = arith.constant 126 : index
      %566 = memref.load %arg2[%c126] : memref<144xf32, #tpu.memory_space<smem>>
      %567 = vector.broadcast %566 : f32 to vector<8x128xf32>
      %568 = arith.mulf %567, %8 : vector<8x128xf32>
      %569 = vector.broadcast %565 : f32 to vector<8x128xf32>
      %570 = arith.addf %569, %568 : vector<8x128xf32>
      %c127 = arith.constant 127 : index
      %571 = memref.load %arg2[%c127] : memref<144xf32, #tpu.memory_space<smem>>
      %572 = vector.broadcast %571 : f32 to vector<8x128xf32>
      %573 = arith.mulf %572, %11 : vector<8x128xf32>
      %574 = arith.addf %570, %573 : vector<8x128xf32>
      %c128 = arith.constant 128 : index
      %575 = memref.load %arg2[%c128] : memref<144xf32, #tpu.memory_space<smem>>
      %576 = vector.broadcast %575 : f32 to vector<8x128xf32>
      %577 = arith.mulf %576, %14 : vector<8x128xf32>
      %578 = arith.addf %574, %577 : vector<8x128xf32>
      %c129 = arith.constant 129 : index
      %579 = memref.load %arg2[%c129] : memref<144xf32, #tpu.memory_space<smem>>
      %580 = vector.broadcast %579 : f32 to vector<8x128xf32>
      %581 = arith.mulf %580, %17 : vector<8x128xf32>
      %582 = arith.addf %578, %581 : vector<8x128xf32>
      %c130 = arith.constant 130 : index
      %583 = memref.load %arg2[%c130] : memref<144xf32, #tpu.memory_space<smem>>
      %584 = vector.broadcast %583 : f32 to vector<8x128xf32>
      %585 = arith.mulf %584, %20 : vector<8x128xf32>
      %586 = arith.addf %582, %585 : vector<8x128xf32>
      %c131 = arith.constant 131 : index
      %587 = memref.load %arg2[%c131] : memref<144xf32, #tpu.memory_space<smem>>
      %588 = vector.broadcast %587 : f32 to vector<8x128xf32>
      %589 = arith.mulf %588, %23 : vector<8x128xf32>
      %590 = arith.addf %586, %589 : vector<8x128xf32>
      %c132 = arith.constant 132 : index
      %591 = memref.load %arg2[%c132] : memref<144xf32, #tpu.memory_space<smem>>
      %592 = vector.broadcast %591 : f32 to vector<8x128xf32>
      %593 = arith.mulf %592, %26 : vector<8x128xf32>
      %594 = arith.addf %590, %593 : vector<8x128xf32>
      %c133 = arith.constant 133 : index
      %595 = memref.load %arg2[%c133] : memref<144xf32, #tpu.memory_space<smem>>
      %596 = vector.broadcast %595 : f32 to vector<8x128xf32>
      %597 = arith.mulf %596, %29 : vector<8x128xf32>
      %598 = arith.addf %594, %597 : vector<8x128xf32>
      %c134 = arith.constant 134 : index
      %599 = memref.load %arg2[%c134] : memref<144xf32, #tpu.memory_space<smem>>
      %600 = vector.broadcast %599 : f32 to vector<8x128xf32>
      %601 = arith.mulf %600, %32 : vector<8x128xf32>
      %602 = arith.addf %598, %601 : vector<8x128xf32>
      %c15_45 = arith.constant 15 : index
      %603 = memref.load %arg3[%c15_45] : memref<16xf32, #tpu.memory_space<smem>>
      %c135 = arith.constant 135 : index
      %604 = memref.load %arg2[%c135] : memref<144xf32, #tpu.memory_space<smem>>
      %605 = vector.broadcast %604 : f32 to vector<8x128xf32>
      %606 = arith.mulf %605, %8 : vector<8x128xf32>
      %607 = vector.broadcast %603 : f32 to vector<8x128xf32>
      %608 = arith.addf %607, %606 : vector<8x128xf32>
      %c136 = arith.constant 136 : index
      %609 = memref.load %arg2[%c136] : memref<144xf32, #tpu.memory_space<smem>>
      %610 = vector.broadcast %609 : f32 to vector<8x128xf32>
      %611 = arith.mulf %610, %11 : vector<8x128xf32>
      %612 = arith.addf %608, %611 : vector<8x128xf32>
      %c137 = arith.constant 137 : index
      %613 = memref.load %arg2[%c137] : memref<144xf32, #tpu.memory_space<smem>>
      %614 = vector.broadcast %613 : f32 to vector<8x128xf32>
      %615 = arith.mulf %614, %14 : vector<8x128xf32>
      %616 = arith.addf %612, %615 : vector<8x128xf32>
      %c138 = arith.constant 138 : index
      %617 = memref.load %arg2[%c138] : memref<144xf32, #tpu.memory_space<smem>>
      %618 = vector.broadcast %617 : f32 to vector<8x128xf32>
      %619 = arith.mulf %618, %17 : vector<8x128xf32>
      %620 = arith.addf %616, %619 : vector<8x128xf32>
      %c139 = arith.constant 139 : index
      %621 = memref.load %arg2[%c139] : memref<144xf32, #tpu.memory_space<smem>>
      %622 = vector.broadcast %621 : f32 to vector<8x128xf32>
      %623 = arith.mulf %622, %20 : vector<8x128xf32>
      %624 = arith.addf %620, %623 : vector<8x128xf32>
      %c140 = arith.constant 140 : index
      %625 = memref.load %arg2[%c140] : memref<144xf32, #tpu.memory_space<smem>>
      %626 = vector.broadcast %625 : f32 to vector<8x128xf32>
      %627 = arith.mulf %626, %23 : vector<8x128xf32>
      %628 = arith.addf %624, %627 : vector<8x128xf32>
      %c141 = arith.constant 141 : index
      %629 = memref.load %arg2[%c141] : memref<144xf32, #tpu.memory_space<smem>>
      %630 = vector.broadcast %629 : f32 to vector<8x128xf32>
      %631 = arith.mulf %630, %26 : vector<8x128xf32>
      %632 = arith.addf %628, %631 : vector<8x128xf32>
      %c142 = arith.constant 142 : index
      %633 = memref.load %arg2[%c142] : memref<144xf32, #tpu.memory_space<smem>>
      %634 = vector.broadcast %633 : f32 to vector<8x128xf32>
      %635 = arith.mulf %634, %29 : vector<8x128xf32>
      %636 = arith.addf %632, %635 : vector<8x128xf32>
      %c143 = arith.constant 143 : index
      %637 = memref.load %arg2[%c143] : memref<144xf32, #tpu.memory_space<smem>>
      %638 = vector.broadcast %637 : f32 to vector<8x128xf32>
      %639 = arith.mulf %638, %32 : vector<8x128xf32>
      %640 = arith.addf %636, %639 : vector<8x128xf32>
      %641 = arith.maximumf %70, %108 : vector<8x128xf32>
      %642 = arith.maximumf %641, %146 : vector<8x128xf32>
      %643 = arith.maximumf %642, %184 : vector<8x128xf32>
      %644 = arith.maximumf %643, %222 : vector<8x128xf32>
      %645 = arith.maximumf %644, %260 : vector<8x128xf32>
      %646 = arith.maximumf %645, %298 : vector<8x128xf32>
      %647 = arith.maximumf %646, %336 : vector<8x128xf32>
      %648 = arith.maximumf %647, %374 : vector<8x128xf32>
      %649 = arith.maximumf %648, %412 : vector<8x128xf32>
      %650 = arith.maximumf %649, %450 : vector<8x128xf32>
      %651 = arith.maximumf %650, %488 : vector<8x128xf32>
      %652 = arith.maximumf %651, %526 : vector<8x128xf32>
      %653 = arith.maximumf %652, %564 : vector<8x128xf32>
      %654 = arith.maximumf %653, %602 : vector<8x128xf32>
      %655 = arith.maximumf %654, %640 : vector<8x128xf32>
      %656 = arith.subf %70, %655 : vector<8x128xf32>
      %657 = math.exp %656 : vector<8x128xf32>
      %c0_46 = arith.constant 0 : index
      %c0_47 = arith.constant 0 : index
      %c0_48 = arith.constant 0 : index
      %c0_49 = arith.constant 0 : index
      %658 = vector.load %arg4[%c0_46, %c0_47, %c0_48, %c0_49] : memref<2x16x8x128xf32, #tpu.memory_space<vmem>>, vector<1x1x8x128xf32>
      %659 = vector.shape_cast %658 : vector<1x1x8x128xf32> to vector<8x128xf32>
      %c1_50 = arith.constant 1 : index
      %c0_51 = arith.constant 0 : index
      %c0_52 = arith.constant 0 : index
      %c0_53 = arith.constant 0 : index
      %660 = vector.load %arg4[%c1_50, %c0_51, %c0_52, %c0_53] : memref<2x16x8x128xf32, #tpu.memory_space<vmem>>, vector<1x1x8x128xf32>
      %661 = vector.shape_cast %660 : vector<1x1x8x128xf32> to vector<8x128xf32>
      %662 = arith.mulf %657, %659 : vector<8x128xf32>
      %663 = arith.mulf %657, %661 : vector<8x128xf32>
      %664 = arith.subf %108, %655 : vector<8x128xf32>
      %665 = math.exp %664 : vector<8x128xf32>
      %c0_54 = arith.constant 0 : index
      %c1_55 = arith.constant 1 : index
      %c0_56 = arith.constant 0 : index
      %c0_57 = arith.constant 0 : index
      %666 = vector.load %arg4[%c0_54, %c1_55, %c0_56, %c0_57] : memref<2x16x8x128xf32, #tpu.memory_space<vmem>>, vector<1x1x8x128xf32>
      %667 = vector.shape_cast %666 : vector<1x1x8x128xf32> to vector<8x128xf32>
      %c1_58 = arith.constant 1 : index
      %c1_59 = arith.constant 1 : index
      %c0_60 = arith.constant 0 : index
      %c0_61 = arith.constant 0 : index
      %668 = vector.load %arg4[%c1_58, %c1_59, %c0_60, %c0_61] : memref<2x16x8x128xf32, #tpu.memory_space<vmem>>, vector<1x1x8x128xf32>
      %669 = vector.shape_cast %668 : vector<1x1x8x128xf32> to vector<8x128xf32>
      %670 = arith.addf %657, %665 : vector<8x128xf32>
      %671 = arith.mulf %665, %667 : vector<8x128xf32>
      %672 = arith.addf %662, %671 : vector<8x128xf32>
      %673 = arith.mulf %665, %669 : vector<8x128xf32>
      %674 = arith.addf %663, %673 : vector<8x128xf32>
      %675 = arith.subf %146, %655 : vector<8x128xf32>
      %676 = math.exp %675 : vector<8x128xf32>
      %c0_62 = arith.constant 0 : index
      %c2_63 = arith.constant 2 : index
      %c0_64 = arith.constant 0 : index
      %c0_65 = arith.constant 0 : index
      %677 = vector.load %arg4[%c0_62, %c2_63, %c0_64, %c0_65] : memref<2x16x8x128xf32, #tpu.memory_space<vmem>>, vector<1x1x8x128xf32>
      %678 = vector.shape_cast %677 : vector<1x1x8x128xf32> to vector<8x128xf32>
      %c1_66 = arith.constant 1 : index
      %c2_67 = arith.constant 2 : index
      %c0_68 = arith.constant 0 : index
      %c0_69 = arith.constant 0 : index
      %679 = vector.load %arg4[%c1_66, %c2_67, %c0_68, %c0_69] : memref<2x16x8x128xf32, #tpu.memory_space<vmem>>, vector<1x1x8x128xf32>
      %680 = vector.shape_cast %679 : vector<1x1x8x128xf32> to vector<8x128xf32>
      %681 = arith.addf %670, %676 : vector<8x128xf32>
      %682 = arith.mulf %676, %678 : vector<8x128xf32>
      %683 = arith.addf %672, %682 : vector<8x128xf32>
      %684 = arith.mulf %676, %680 : vector<8x128xf32>
      %685 = arith.addf %674, %684 : vector<8x128xf32>
      %686 = arith.subf %184, %655 : vector<8x128xf32>
      %687 = math.exp %686 : vector<8x128xf32>
      %c0_70 = arith.constant 0 : index
      %c3_71 = arith.constant 3 : index
      %c0_72 = arith.constant 0 : index
      %c0_73 = arith.constant 0 : index
      %688 = vector.load %arg4[%c0_70, %c3_71, %c0_72, %c0_73] : memref<2x16x8x128xf32, #tpu.memory_space<vmem>>, vector<1x1x8x128xf32>
      %689 = vector.shape_cast %688 : vector<1x1x8x128xf32> to vector<8x128xf32>
      %c1_74 = arith.constant 1 : index
      %c3_75 = arith.constant 3 : index
      %c0_76 = arith.constant 0 : index
      %c0_77 = arith.constant 0 : index
      %690 = vector.load %arg4[%c1_74, %c3_75, %c0_76, %c0_77] : memref<2x16x8x128xf32, #tpu.memory_space<vmem>>, vector<1x1x8x128xf32>
      %691 = vector.shape_cast %690 : vector<1x1x8x128xf32> to vector<8x128xf32>
      %692 = arith.addf %681, %687 : vector<8x128xf32>
      %693 = arith.mulf %687, %689 : vector<8x128xf32>
      %694 = arith.addf %683, %693 : vector<8x128xf32>
      %695 = arith.mulf %687, %691 : vector<8x128xf32>
      %696 = arith.addf %685, %695 : vector<8x128xf32>
      %697 = arith.subf %222, %655 : vector<8x128xf32>
      %698 = math.exp %697 : vector<8x128xf32>
      %c0_78 = arith.constant 0 : index
      %c4_79 = arith.constant 4 : index
      %c0_80 = arith.constant 0 : index
      %c0_81 = arith.constant 0 : index
      %699 = vector.load %arg4[%c0_78, %c4_79, %c0_80, %c0_81] : memref<2x16x8x128xf32, #tpu.memory_space<vmem>>, vector<1x1x8x128xf32>
      %700 = vector.shape_cast %699 : vector<1x1x8x128xf32> to vector<8x128xf32>
      %c1_82 = arith.constant 1 : index
      %c4_83 = arith.constant 4 : index
      %c0_84 = arith.constant 0 : index
      %c0_85 = arith.constant 0 : index
      %701 = vector.load %arg4[%c1_82, %c4_83, %c0_84, %c0_85] : memref<2x16x8x128xf32, #tpu.memory_space<vmem>>, vector<1x1x8x128xf32>
      %702 = vector.shape_cast %701 : vector<1x1x8x128xf32> to vector<8x128xf32>
      %703 = arith.addf %692, %698 : vector<8x128xf32>
      %704 = arith.mulf %698, %700 : vector<8x128xf32>
      %705 = arith.addf %694, %704 : vector<8x128xf32>
      %706 = arith.mulf %698, %702 : vector<8x128xf32>
      %707 = arith.addf %696, %706 : vector<8x128xf32>
      %708 = arith.subf %260, %655 : vector<8x128xf32>
      %709 = math.exp %708 : vector<8x128xf32>
      %c0_86 = arith.constant 0 : index
      %c5_87 = arith.constant 5 : index
      %c0_88 = arith.constant 0 : index
      %c0_89 = arith.constant 0 : index
      %710 = vector.load %arg4[%c0_86, %c5_87, %c0_88, %c0_89] : memref<2x16x8x128xf32, #tpu.memory_space<vmem>>, vector<1x1x8x128xf32>
      %711 = vector.shape_cast %710 : vector<1x1x8x128xf32> to vector<8x128xf32>
      %c1_90 = arith.constant 1 : index
      %c5_91 = arith.constant 5 : index
      %c0_92 = arith.constant 0 : index
      %c0_93 = arith.constant 0 : index
      %712 = vector.load %arg4[%c1_90, %c5_91, %c0_92, %c0_93] : memref<2x16x8x128xf32, #tpu.memory_space<vmem>>, vector<1x1x8x128xf32>
      %713 = vector.shape_cast %712 : vector<1x1x8x128xf32> to vector<8x128xf32>
      %714 = arith.addf %703, %709 : vector<8x128xf32>
      %715 = arith.mulf %709, %711 : vector<8x128xf32>
      %716 = arith.addf %705, %715 : vector<8x128xf32>
      %717 = arith.mulf %709, %713 : vector<8x128xf32>
      %718 = arith.addf %707, %717 : vector<8x128xf32>
      %719 = arith.subf %298, %655 : vector<8x128xf32>
      %720 = math.exp %719 : vector<8x128xf32>
      %c0_94 = arith.constant 0 : index
      %c6_95 = arith.constant 6 : index
      %c0_96 = arith.constant 0 : index
      %c0_97 = arith.constant 0 : index
      %721 = vector.load %arg4[%c0_94, %c6_95, %c0_96, %c0_97] : memref<2x16x8x128xf32, #tpu.memory_space<vmem>>, vector<1x1x8x128xf32>
      %722 = vector.shape_cast %721 : vector<1x1x8x128xf32> to vector<8x128xf32>
      %c1_98 = arith.constant 1 : index
      %c6_99 = arith.constant 6 : index
      %c0_100 = arith.constant 0 : index
      %c0_101 = arith.constant 0 : index
      %723 = vector.load %arg4[%c1_98, %c6_99, %c0_100, %c0_101] : memref<2x16x8x128xf32, #tpu.memory_space<vmem>>, vector<1x1x8x128xf32>
      %724 = vector.shape_cast %723 : vector<1x1x8x128xf32> to vector<8x128xf32>
      %725 = arith.addf %714, %720 : vector<8x128xf32>
      %726 = arith.mulf %720, %722 : vector<8x128xf32>
      %727 = arith.addf %716, %726 : vector<8x128xf32>
      %728 = arith.mulf %720, %724 : vector<8x128xf32>
      %729 = arith.addf %718, %728 : vector<8x128xf32>
      %730 = arith.subf %336, %655 : vector<8x128xf32>
      %731 = math.exp %730 : vector<8x128xf32>
      %c0_102 = arith.constant 0 : index
      %c7_103 = arith.constant 7 : index
      %c0_104 = arith.constant 0 : index
      %c0_105 = arith.constant 0 : index
      %732 = vector.load %arg4[%c0_102, %c7_103, %c0_104, %c0_105] : memref<2x16x8x128xf32, #tpu.memory_space<vmem>>, vector<1x1x8x128xf32>
      %733 = vector.shape_cast %732 : vector<1x1x8x128xf32> to vector<8x128xf32>
      %c1_106 = arith.constant 1 : index
      %c7_107 = arith.constant 7 : index
      %c0_108 = arith.constant 0 : index
      %c0_109 = arith.constant 0 : index
      %734 = vector.load %arg4[%c1_106, %c7_107, %c0_108, %c0_109] : memref<2x16x8x128xf32, #tpu.memory_space<vmem>>, vector<1x1x8x128xf32>
      %735 = vector.shape_cast %734 : vector<1x1x8x128xf32> to vector<8x128xf32>
      %736 = arith.addf %725, %731 : vector<8x128xf32>
      %737 = arith.mulf %731, %733 : vector<8x128xf32>
      %738 = arith.addf %727, %737 : vector<8x128xf32>
      %739 = arith.mulf %731, %735 : vector<8x128xf32>
      %740 = arith.addf %729, %739 : vector<8x128xf32>
      %741 = arith.subf %374, %655 : vector<8x128xf32>
      %742 = math.exp %741 : vector<8x128xf32>
      %c0_110 = arith.constant 0 : index
      %c8_111 = arith.constant 8 : index
      %c0_112 = arith.constant 0 : index
      %c0_113 = arith.constant 0 : index
      %743 = vector.load %arg4[%c0_110, %c8_111, %c0_112, %c0_113] : memref<2x16x8x128xf32, #tpu.memory_space<vmem>>, vector<1x1x8x128xf32>
      %744 = vector.shape_cast %743 : vector<1x1x8x128xf32> to vector<8x128xf32>
      %c1_114 = arith.constant 1 : index
      %c8_115 = arith.constant 8 : index
      %c0_116 = arith.constant 0 : index
      %c0_117 = arith.constant 0 : index
      %745 = vector.load %arg4[%c1_114, %c8_115, %c0_116, %c0_117] : memref<2x16x8x128xf32, #tpu.memory_space<vmem>>, vector<1x1x8x128xf32>
      %746 = vector.shape_cast %745 : vector<1x1x8x128xf32> to vector<8x128xf32>
      %747 = arith.addf %736, %742 : vector<8x128xf32>
      %748 = arith.mulf %742, %744 : vector<8x128xf32>
      %749 = arith.addf %738, %748 : vector<8x128xf32>
      %750 = arith.mulf %742, %746 : vector<8x128xf32>
      %751 = arith.addf %740, %750 : vector<8x128xf32>
      %752 = arith.subf %412, %655 : vector<8x128xf32>
      %753 = math.exp %752 : vector<8x128xf32>
      %c0_118 = arith.constant 0 : index
      %c9_119 = arith.constant 9 : index
      %c0_120 = arith.constant 0 : index
      %c0_121 = arith.constant 0 : index
      %754 = vector.load %arg4[%c0_118, %c9_119, %c0_120, %c0_121] : memref<2x16x8x128xf32, #tpu.memory_space<vmem>>, vector<1x1x8x128xf32>
      %755 = vector.shape_cast %754 : vector<1x1x8x128xf32> to vector<8x128xf32>
      %c1_122 = arith.constant 1 : index
      %c9_123 = arith.constant 9 : index
      %c0_124 = arith.constant 0 : index
      %c0_125 = arith.constant 0 : index
      %756 = vector.load %arg4[%c1_122, %c9_123, %c0_124, %c0_125] : memref<2x16x8x128xf32, #tpu.memory_space<vmem>>, vector<1x1x8x128xf32>
      %757 = vector.shape_cast %756 : vector<1x1x8x128xf32> to vector<8x128xf32>
      %758 = arith.addf %747, %753 : vector<8x128xf32>
      %759 = arith.mulf %753, %755 : vector<8x128xf32>
      %760 = arith.addf %749, %759 : vector<8x128xf32>
      %761 = arith.mulf %753, %757 : vector<8x128xf32>
      %762 = arith.addf %751, %761 : vector<8x128xf32>
      %763 = arith.subf %450, %655 : vector<8x128xf32>
      %764 = math.exp %763 : vector<8x128xf32>
      %c0_126 = arith.constant 0 : index
      %c10_127 = arith.constant 10 : index
      %c0_128 = arith.constant 0 : index
      %c0_129 = arith.constant 0 : index
      %765 = vector.load %arg4[%c0_126, %c10_127, %c0_128, %c0_129] : memref<2x16x8x128xf32, #tpu.memory_space<vmem>>, vector<1x1x8x128xf32>
      %766 = vector.shape_cast %765 : vector<1x1x8x128xf32> to vector<8x128xf32>
      %c1_130 = arith.constant 1 : index
      %c10_131 = arith.constant 10 : index
      %c0_132 = arith.constant 0 : index
      %c0_133 = arith.constant 0 : index
      %767 = vector.load %arg4[%c1_130, %c10_131, %c0_132, %c0_133] : memref<2x16x8x128xf32, #tpu.memory_space<vmem>>, vector<1x1x8x128xf32>
      %768 = vector.shape_cast %767 : vector<1x1x8x128xf32> to vector<8x128xf32>
      %769 = arith.addf %758, %764 : vector<8x128xf32>
      %770 = arith.mulf %764, %766 : vector<8x128xf32>
      %771 = arith.addf %760, %770 : vector<8x128xf32>
      %772 = arith.mulf %764, %768 : vector<8x128xf32>
      %773 = arith.addf %762, %772 : vector<8x128xf32>
      %774 = arith.subf %488, %655 : vector<8x128xf32>
      %775 = math.exp %774 : vector<8x128xf32>
      %c0_134 = arith.constant 0 : index
      %c11_135 = arith.constant 11 : index
      %c0_136 = arith.constant 0 : index
      %c0_137 = arith.constant 0 : index
      %776 = vector.load %arg4[%c0_134, %c11_135, %c0_136, %c0_137] : memref<2x16x8x128xf32, #tpu.memory_space<vmem>>, vector<1x1x8x128xf32>
      %777 = vector.shape_cast %776 : vector<1x1x8x128xf32> to vector<8x128xf32>
      %c1_138 = arith.constant 1 : index
      %c11_139 = arith.constant 11 : index
      %c0_140 = arith.constant 0 : index
      %c0_141 = arith.constant 0 : index
      %778 = vector.load %arg4[%c1_138, %c11_139, %c0_140, %c0_141] : memref<2x16x8x128xf32, #tpu.memory_space<vmem>>, vector<1x1x8x128xf32>
      %779 = vector.shape_cast %778 : vector<1x1x8x128xf32> to vector<8x128xf32>
      %780 = arith.addf %769, %775 : vector<8x128xf32>
      %781 = arith.mulf %775, %777 : vector<8x128xf32>
      %782 = arith.addf %771, %781 : vector<8x128xf32>
      %783 = arith.mulf %775, %779 : vector<8x128xf32>
      %784 = arith.addf %773, %783 : vector<8x128xf32>
      %785 = arith.subf %526, %655 : vector<8x128xf32>
      %786 = math.exp %785 : vector<8x128xf32>
      %c0_142 = arith.constant 0 : index
      %c12_143 = arith.constant 12 : index
      %c0_144 = arith.constant 0 : index
      %c0_145 = arith.constant 0 : index
      %787 = vector.load %arg4[%c0_142, %c12_143, %c0_144, %c0_145] : memref<2x16x8x128xf32, #tpu.memory_space<vmem>>, vector<1x1x8x128xf32>
      %788 = vector.shape_cast %787 : vector<1x1x8x128xf32> to vector<8x128xf32>
      %c1_146 = arith.constant 1 : index
      %c12_147 = arith.constant 12 : index
      %c0_148 = arith.constant 0 : index
      %c0_149 = arith.constant 0 : index
      %789 = vector.load %arg4[%c1_146, %c12_147, %c0_148, %c0_149] : memref<2x16x8x128xf32, #tpu.memory_space<vmem>>, vector<1x1x8x128xf32>
      %790 = vector.shape_cast %789 : vector<1x1x8x128xf32> to vector<8x128xf32>
      %791 = arith.addf %780, %786 : vector<8x128xf32>
      %792 = arith.mulf %786, %788 : vector<8x128xf32>
      %793 = arith.addf %782, %792 : vector<8x128xf32>
      %794 = arith.mulf %786, %790 : vector<8x128xf32>
      %795 = arith.addf %784, %794 : vector<8x128xf32>
      %796 = arith.subf %564, %655 : vector<8x128xf32>
      %797 = math.exp %796 : vector<8x128xf32>
      %c0_150 = arith.constant 0 : index
      %c13_151 = arith.constant 13 : index
      %c0_152 = arith.constant 0 : index
      %c0_153 = arith.constant 0 : index
      %798 = vector.load %arg4[%c0_150, %c13_151, %c0_152, %c0_153] : memref<2x16x8x128xf32, #tpu.memory_space<vmem>>, vector<1x1x8x128xf32>
      %799 = vector.shape_cast %798 : vector<1x1x8x128xf32> to vector<8x128xf32>
      %c1_154 = arith.constant 1 : index
      %c13_155 = arith.constant 13 : index
      %c0_156 = arith.constant 0 : index
      %c0_157 = arith.constant 0 : index
      %800 = vector.load %arg4[%c1_154, %c13_155, %c0_156, %c0_157] : memref<2x16x8x128xf32, #tpu.memory_space<vmem>>, vector<1x1x8x128xf32>
      %801 = vector.shape_cast %800 : vector<1x1x8x128xf32> to vector<8x128xf32>
      %802 = arith.addf %791, %797 : vector<8x128xf32>
      %803 = arith.mulf %797, %799 : vector<8x128xf32>
      %804 = arith.addf %793, %803 : vector<8x128xf32>
      %805 = arith.mulf %797, %801 : vector<8x128xf32>
      %806 = arith.addf %795, %805 : vector<8x128xf32>
      %807 = arith.subf %602, %655 : vector<8x128xf32>
      %808 = math.exp %807 : vector<8x128xf32>
      %c0_158 = arith.constant 0 : index
      %c14_159 = arith.constant 14 : index
      %c0_160 = arith.constant 0 : index
      %c0_161 = arith.constant 0 : index
      %809 = vector.load %arg4[%c0_158, %c14_159, %c0_160, %c0_161] : memref<2x16x8x128xf32, #tpu.memory_space<vmem>>, vector<1x1x8x128xf32>
      %810 = vector.shape_cast %809 : vector<1x1x8x128xf32> to vector<8x128xf32>
      %c1_162 = arith.constant 1 : index
      %c14_163 = arith.constant 14 : index
      %c0_164 = arith.constant 0 : index
      %c0_165 = arith.constant 0 : index
      %811 = vector.load %arg4[%c1_162, %c14_163, %c0_164, %c0_165] : memref<2x16x8x128xf32, #tpu.memory_space<vmem>>, vector<1x1x8x128xf32>
      %812 = vector.shape_cast %811 : vector<1x1x8x128xf32> to vector<8x128xf32>
      %813 = arith.addf %802, %808 : vector<8x128xf32>
      %814 = arith.mulf %808, %810 : vector<8x128xf32>
      %815 = arith.addf %804, %814 : vector<8x128xf32>
      %816 = arith.mulf %808, %812 : vector<8x128xf32>
      %817 = arith.addf %806, %816 : vector<8x128xf32>
      %818 = arith.subf %640, %655 : vector<8x128xf32>
      %819 = math.exp %818 : vector<8x128xf32>
      %c0_166 = arith.constant 0 : index
      %c15_167 = arith.constant 15 : index
      %c0_168 = arith.constant 0 : index
      %c0_169 = arith.constant 0 : index
      %820 = vector.load %arg4[%c0_166, %c15_167, %c0_168, %c0_169] : memref<2x16x8x128xf32, #tpu.memory_space<vmem>>, vector<1x1x8x128xf32>
      %821 = vector.shape_cast %820 : vector<1x1x8x128xf32> to vector<8x128xf32>
      %c1_170 = arith.constant 1 : index
      %c15_171 = arith.constant 15 : index
      %c0_172 = arith.constant 0 : index
      %c0_173 = arith.constant 0 : index
      %822 = vector.load %arg4[%c1_170, %c15_171, %c0_172, %c0_173] : memref<2x16x8x128xf32, #tpu.memory_space<vmem>>, vector<1x1x8x128xf32>
      %823 = vector.shape_cast %822 : vector<1x1x8x128xf32> to vector<8x128xf32>
      %824 = arith.addf %813, %819 : vector<8x128xf32>
      %825 = arith.mulf %819, %821 : vector<8x128xf32>
      %826 = arith.addf %815, %825 : vector<8x128xf32>
      %827 = arith.mulf %819, %823 : vector<8x128xf32>
      %828 = arith.addf %817, %827 : vector<8x128xf32>
      %829 = tpu.reciprocal %824 {approx = true} : vector<8x128xf32> -> vector<8x128xf32>
      %830 = arith.mulf %826, %829 : vector<8x128xf32>
      %831 = vector.shape_cast %830 : vector<8x128xf32> to vector<1x8x128xf32>
      %cst_174 = arith.constant dense<0.000000e+00> : vector<1xf32>
      %832 = vector.multi_reduction <add>, %831, %cst_174 [1, 2] : vector<1x8x128xf32> to vector<1xf32>
      %833 = vector.shape_cast %832 : vector<1xf32> to vector<1x1x1xf32>
      %834 = vector.extract %833[0, 0, 0] : f32 from vector<1x1x1xf32>
      %c0_175 = arith.constant 0 : index
      %835 = memref.load %arg5[%c0_175] : memref<2xf32, #tpu.memory_space<smem>>
      %836 = arith.addf %834, %835 : f32
      %837 = arith.mulf %828, %829 : vector<8x128xf32>
      %838 = vector.shape_cast %837 : vector<8x128xf32> to vector<1x8x128xf32>
      %cst_176 = arith.constant dense<0.000000e+00> : vector<1xf32>
      %839 = vector.multi_reduction <add>, %838, %cst_176 [1, 2] : vector<1x8x128xf32> to vector<1xf32>
      %840 = vector.shape_cast %839 : vector<1xf32> to vector<1x1x1xf32>
      %841 = vector.extract %840[0, 0, 0] : f32 from vector<1x1x1xf32>
      %c1_177 = arith.constant 1 : index
      %842 = memref.load %arg5[%c1_177] : memref<2xf32, #tpu.memory_space<smem>>
      %843 = arith.addf %841, %842 : f32
      %c0_i32_178 = arith.constant 0 : i32
      %844 = vector.broadcast %c0_i32_178 : i32 to vector<1x128xi32>
      %845 = arith.cmpi eq, %0, %844 : vector<1x128xi32>
      %c1_i32_179 = arith.constant 1 : i32
      %846 = vector.broadcast %c1_i32_179 : i32 to vector<1x128xi32>
      %847 = arith.cmpi eq, %0, %846 : vector<1x128xi32>
      %cst_180 = arith.constant 0.000000e+00 : f32
      %848 = vector.broadcast %843 : f32 to vector<1x128xf32>
      %849 = vector.broadcast %cst_180 : f32 to vector<1x128xf32>
      %850 = arith.select %847, %848, %849 : vector<1x128xi1>, vector<1x128xf32>
      %851 = vector.broadcast %836 : f32 to vector<1x128xf32>
      %852 = arith.select %845, %851, %850 : vector<1x128xi1>, vector<1x128xf32>
      %853 = vector.broadcast %arg7 : i32 to vector<8x1xi32>
      %854 = arith.cmpi eq, %1, %853 : vector<8x1xi32>
      %855 = vector.shape_cast %854 : vector<8x1xi1> to vector<8x1xi1>
      %856 = vector.broadcast %855 : vector<8x1xi1> to vector<8x128xi1>
      %857 = vector.shape_cast %852 : vector<1x128xf32> to vector<1x128xf32>
      %858 = vector.broadcast %857 : vector<1x128xf32> to vector<8x128xf32>
      %859 = arith.select %856, %858, %arg8 : vector<8x128xi1>, vector<8x128xf32>
      scf.yield %859 : vector<8x128xf32>
    }
    %c8_i32_0 = arith.constant 8 : i32
    %c0 = arith.constant 0 : index
    %c0_1 = arith.constant 0 : index
    %5 = vector.load %arg6[%c0, %c0_1] : memref<8x128xf32, #tpu.memory_space<vmem>>, vector<8x128xf32>
    tpu.vector_store %arg6[%c0, %c0_1], %4 {strides = array<i32>} : memref<8x128xf32, #tpu.memory_space<vmem>>, vector<8x128xf32>,
    return
  }
  func.func @transform_0(%arg0: i32) -> (i32, i32, i32, i32) {
    %c0_i32 = arith.constant 0 : i32
    %c0_i32_0 = arith.constant 0 : i32
    %c0_i32_1 = arith.constant 0 : i32
    %c0_i32_2 = arith.constant 0 : i32
    return %arg0, %c0_i32, %c0_i32_0, %c0_i32_1 : i32, i32, i32, i32
  }
  func.func @transform_1(%arg0: i32) -> i32 {
    %c0_i32 = arith.constant 0 : i32
    %c0_i32_0 = arith.constant 0 : i32
    return %c0_i32 : i32
  }
  func.func @transform_2(%arg0: i32) -> i32 {
    %c0_i32 = arith.constant 0 : i32
    %c0_i32_0 = arith.constant 0 : i32
    return %c0_i32 : i32
  }
  func.func @transform_3(%arg0: i32) -> (i32, i32, i32, i32) {
    %c0_i32 = arith.constant 0 : i32
    %c0_i32_0 = arith.constant 0 : i32
    %c0_i32_1 = arith.constant 0 : i32
    %c0_i32_2 = arith.constant 0 : i32
    %c0_i32_3 = arith.constant 0 : i32
    return %c0_i32, %c0_i32_0, %c0_i32_1, %c0_i32_2 : i32, i32, i32, i32
  }
  func.func @transform_4(%arg0: i32) -> i32 {
    %c0_i32 = arith.constant 0 : i32
    %c0_i32_0 = arith.constant 0 : i32
    return %c0_i32 : i32
  }
  func.func @transform_5(%arg0: i32) -> (i32, i32) {
    %c0_i32 = arith.constant 0 : i32
    %c0_i32_0 = arith.constant 0 : i32
    return %arg0, %c0_i32 : i32, i32
  }
}

</mosaic_0001>

<bundles_post_ra>
// kernel: tpu_custom_call.1
= control target key start
LH: loop header
LB: loop body
LE: loop exit
PB: predicated region body
PF: predicated region fallthrough
CT: control target
= control target key end

     0   :  { %10 = vsyncpa [#allocation3], 0  ;;  %s2258_s0 = inlined_call_operand.hbm [shape: f32[8,9,8,128], index: 0, kind: input, shape index: {}]   ;;  %s2259_s1 = inlined_call_operand.vmem [shape: f32[144], index: 1, kind: input, shape index: {}]   ;;  %s2260_s2 = inlined_call_operand.vmem [shape: f32[16], index: 2, kind: input, shape index: {}]   ;;  %s2261_s3 = inlined_call_operand.hbm [shape: f32[2,16,8,128], index: 3, kind: input, shape index: {}]   ;;  %s2262_s4 = inlined_call_operand.vmem [shape: f32[2], index: 4, kind: input, shape index: {}]   ;;  %s2263_s5 = inlined_call_operand.hbm [shape: f32[8,128], index: 5, kind: output, shape index: {}]  }
   0x1   :  { %11 = vsyncpa [#allocation5], 0 }
   0x2   :  { %12 = vsyncpa [#allocation8], 0 }
   0x3   :  { %13 = vsyncpa [#allocation10], 0  ;;  %s43_s20 = sshll.u32 %s2260_s2, 4  ;;  %s44_s20 = int_to_ptr.vmem [resolvable:$true] %s43_s20 }
   0x4   :  { %14 = vsyncpa [#allocation4], 0  ;;  %s1260_s21 = scalar_lea.vmem %s44_s20, 16  ;;  %p1265_p1 = scmp.lt.s32.totalorder %s44_s20, %s44_s20 }
   0x5   :  { %p1261_p0 = scmp.ne.s32.totalorder %s44_s20, %s1260_s21  ;;  %p1266_p2 = scmp.lt.s32.totalorder %s1260_s21, %s1260_s21 }
   0x7   :  { %p1267_p3 = por %p1266_p2, %p1265_p1 }
   0x9   :  { %p1268_p4 = pnand %p1267_p3, %p1261_p0 }
   0xb   :  { %1271 = shalt.err (!%p1268_p4)
}
   0xc   :  { %s1390_s22 = smov [#allocation7]   ;;  %s1391_s23 = smov [#allocation2]  }
   0xd   :  { %46 = dma.vmem_to_smem %s44_s20, 16, %s1390_s22, [#allocation8]  }
   0xe   :  { %s20_s24 = sshll.u32 %s1391_s23, 4  ;;  %s1272_s27 = scalar_lea.hbm %s2258_s0, 9216  ;;  %s21_s24 = int_to_ptr.vmem [resolvable:$true] %s20_s24 }
   0xf   :  { %p1273_p5 = scmp.ne.s32.totalorder %s2258_s0, %s1272_s27  ;;  %p1276_p6 = scmp.lt.u32.totalorder %s1272_s27, %s2258_s0 }
  0x11   :  { %p1278_p7 = pnand %p1276_p6, %p1273_p5 }
  0x13   :  { %1281 = shalt.err (!%p1278_p7)
}
  0x14   :  { %s1282_s6 = scalar_lea.vmem %s21_s24, 9216  ;;  %p1287_p9 = scmp.lt.s32.totalorder %s21_s24, %s21_s24 }
  0x15   :  { %p1283_p8 = scmp.ne.s32.totalorder %s21_s24, %s1282_s6  ;;  %p1288_p10 = scmp.lt.s32.totalorder %s1282_s6, %s1282_s6 }
  0x17   :  { %p1289_p11 = por %p1288_p10, %p1287_p9 }
  0x19   :  { %p1290_p12 = pnand %p1289_p11, %p1283_p8 }
  0x1b   :  { %1293 = shalt.err (!%p1290_p12)
}
  0x1c   :  { %s1392_s7 = smov 128   ;;  %s1393_s8 = smov 8  }
  0x1d   :  { %26 = dma.hbm_to_vmem [thread:$0]  %s2258_s0, 9216, %s21_s24, [#allocation3], %s1392_s7, %s1392_s7, %s1393_s8  }
  0x1e   :  { %s33_s13 = sshll.u32 %s2259_s1, 4  ;;  %s34_s13 = int_to_ptr.vmem [resolvable:$true] %s33_s13 }
  0x1f   :  { %s1294_s14 = scalar_lea.vmem %s34_s13, 32  ;;  %p1299_p0 = scmp.lt.s32.totalorder %s34_s13, %s34_s13 }
  0x20   :  { %p1295_p13 = scmp.ne.s32.totalorder %s34_s13, %s1294_s14  ;;  %p1300_p1 = scmp.lt.s32.totalorder %s1294_s14, %s1294_s14 }
  0x22   :  { %p1301_p2 = por %p1300_p1, %p1299_p0 }
  0x24   :  { %p1302_p3 = pnand %p1301_p2, %p1295_p13 }
  0x26   :  { %1305 = shalt.err (!%p1302_p3)
}
  0x27   :  { %s1394_s15 = smov [#allocation6]   ;;  %s1395_s16 = smov [#allocation9]  }
  0x28   :  { %36 = dma.vmem_to_smem %s34_s13, 32, %s1394_s15, [#allocation5]  }
  0x29   :  { %s52_s17 = sshll.u32 %s1395_s16, 4  ;;  %s65_s0 = sshll.u32 %s2262_s4, 4  ;;  %s53_s17 = int_to_ptr.vmem [resolvable:$true] %s52_s17  ;;  %s66_s0 = int_to_ptr.vmem [resolvable:$true] %s65_s0 }
  0x2a   :  { %s1306_s21 = scalar_lea.hbm %s2261_s3, 4096 }
  0x2b   :  { %p1307_p4 = scmp.ne.s32.totalorder %s2261_s3, %s1306_s21  ;;  %p1310_p5 = scmp.lt.u32.totalorder %s1306_s21, %s2261_s3 }
  0x2d   :  { %p1312_p6 = pnand %p1310_p5, %p1307_p4 }
  0x2f   :  { %1315 = shalt.err (!%p1312_p6)
}
  0x30   :  { %s1316_s26 = scalar_lea.vmem %s53_s17, 4096  ;;  %p1321_p8 = scmp.lt.s32.totalorder %s53_s17, %s53_s17 }
  0x31   :  { %p1317_p7 = scmp.ne.s32.totalorder %s53_s17, %s1316_s26  ;;  %p1322_p9 = scmp.lt.s32.totalorder %s1316_s26, %s1316_s26 }
  0x33   :  { %p1323_p10 = por %p1322_p9, %p1321_p8 }
  0x35   :  { %p1324_p11 = pnand %p1323_p10, %p1317_p7 }
  0x37   :  { %1327 = shalt.err (!%p1324_p11)
}
  0x38   :  { %58 = dma.hbm_to_vmem [thread:$0]  %s2261_s3, 4096, %s53_s17, [#allocation10], %s1392_s7, %s1392_s7, %s1393_s8  }
  0x39   :  { %s1328_s28 = scalar_lea.vmem %s66_s0, 16  ;;  %p1333_p13 = scmp.lt.s32.totalorder %s66_s0, %s66_s0 }
  0x3a   :  { %p1329_p12 = scmp.ne.s32.totalorder %s66_s0, %s1328_s28  ;;  %p1334_p0 = scmp.lt.s32.totalorder %s1328_s28, %s1328_s28 }
  0x3c   :  { %p1335_p1 = por %p1334_p0, %p1333_p13 }
  0x3e   :  { %p1336_p2 = pnand %p1335_p1, %p1329_p12 }
  0x40   :  { %1339 = shalt.err (!%p1336_p2)
}
  0x41   :  { %s1396_s2 = smov [#allocation11]  }
  0x42   :  { %68 = dma.vmem_to_smem %s66_s0, 16, %s1396_s2, [#allocation8]  }
  0x43   :  { %1370 = dma.done.wait [#allocation3], 9216  }
  0x44   :  { %1371 = vsyncadd [#allocation3], 4294958080 }
  0x45   :  { %1372 = dma.done.wait [#allocation5], 32  }
  0x46   :  { %1373 = vsyncadd [#allocation5], 4294967264 }
  0x47   :  { %1374 = dma.done.wait [#allocation8], 16  }
  0x48   :  { %1375 = vsyncadd [#allocation8], 4294967280 }
  0x49   :  { %1376 = dma.done.wait [#allocation10], 4096  }
  0x4a   :  { %1377 = vsyncadd [#allocation10], 4294963200 }
  0x4b   :  { %1378 = dma.done.wait [#allocation8], 16  }
  0x4c   :  { %1379 = vsyncadd [#allocation8], 4294967280 }
  0x4d   :  { %84 = sfence }
  0x4e   :  { %v85_v0 = vlaneseq  ;;  %v1471_v3 = vmov 0.0   ;;  %s1473_s3 = smov 0  }
  0x50   :  { %v1467_v1 = vand.u32 127, %v85_v0  ;;  %v1469_v2 = vshrl.u32 %v85_v0, 7 }
  0x51 LB: > { %s123_s29 = sld [smem:[#allocation7]]  ;;  %s96_s6 = smul.u32 72, %s1388_s3  ;;  %s1388_s3 = sphi %s1473_s3, %s94_s3   ;;  %v1384_v3 = vphi %v1471_v3, %v2264_v3  }
  0x52   : > { %s124_s30 = sld [smem:[#allocation6]]  ;;  %s1031_s7 = sld [smem:[#allocation6 + $0x1]]  ;;  %vm960_vm0 = vcmp.eq.s32.totalorder %v1467_v1, 1  ;;  %vm959_vm1 = vcmp.eq.s32.totalorder %v1467_v1, 0 }
  0x53   : > { %s1032_s8 = sld [smem:[#allocation6 + $0x2]]  ;;  %s1482_s9 = sld [smem:[#allocation6 + $0x3]] }
  0x54   : > { %s1484_s10 = scalar_lea.vmem [#allocation2], %s96_s6  ;;  %s1489_s11 = sld [smem:[#allocation6 + $0x4]] }
  0x55   : > { %v1487_v4 = vld [vmem:[%s1484_s10] sm:$0xff]  ;;  %s1491_s12 = sld [smem:[#allocation6 + $0x5]]  ;;  %v1494_v7 = vld [vmem:[%s1484_s10 + $0x8] sm:$0xff]  ;;  %s1497_s13 = sld [smem:[#allocation6 + $0x6]]  ;;  %v1507_v12 = vld [vmem:[%s1484_s10 + $0x10] sm:$0xff] }
  0x56   : > { %s1499_s14 = sld [smem:[#allocation6 + $0x7]]  ;;  %s1502_s15 = sld [smem:[#allocation6 + $0x9]]  ;;  %v1526_v17 = vld [vmem:[%s1484_s10 + $0x18] sm:$0xff]  ;;  %v1545_v25 = vld [vmem:[%s1484_s10 + $0x20] sm:$0xff]  ;;  %v1548_v26 = vld [vmem:[%s1484_s10 + $0x28] sm:$0xff] }
  0x57   : > { %v127_v6 = vstv %s123_s29  ;;  %s1504_s16 = sld [smem:[#allocation6 + $0xa]]  ;;  %s1509_s17 = sld [smem:[#allocation6 + $0xb]]  ;;  %v1557_v29 = vld [vmem:[%s1484_s10 + $0x30] sm:$0xff]  ;;  %v1560_v30 = vld [vmem:[%s1484_s10 + $0x38] sm:$0xff] }
  0x58   : > { %v125_v5 = vstv %s124_s30  ;;  %v130_v9 = vstv %s1031_s7  ;;  %s1512_s18 = sld [smem:[#allocation6 + $0x8]]  ;;  %s1514_s19 = sld [smem:[#allocation7 + $0x1]] }
  0x59   : > { %v126_v8 = vmul.f32 %v125_v5, %v1487_v4  ;;  %v131_v10 = vmul.f32 %v1494_v7, %v130_v9  ;;  %v134_v11 = vstv %s1032_s8  ;;  %v138_v16 = vstv %s1482_s9  ;;  %s1517_s0 = sld [smem:[#allocation6 + $0xc]]  ;;  %s1519_s20 = sld [smem:[#allocation6 + $0xd]] }
  0x5a   : > { %v135_v14 = vmul.f32 %v1507_v12, %v134_v11  ;;  %s1521_s1 = sld [smem:[#allocation6 + $0xe]]  ;;  %s1523_s21 = sld [smem:[#allocation7 + $0x2]]  ;;  %v139_v19 = vmul.f32 %v1526_v17, %v138_v16  ;;  %v142_v20 = vstv %s1489_s11 }
  0x5b   : > { %v128_v13 = vadd.f32 %v127_v6, %v126_v8  ;;  %s1528_s22 = sld [smem:[#allocation6 + $0x12]]  ;;  %s1530_s23 = sld [smem:[#allocation6 + $0x13]]  ;;  %v146_v21 = vstv %s1491_s12  ;;  %v150_v22 = vstv %s1497_s13  ;;  %v143_v31 = vmul.f32 %v1545_v25, %v142_v20  ;;  %v1657_v20 = vld [vmem:[%s1484_s10 + $0x40] sm:$0xff] }
  0x5c   : > { %s1535_s24 = sld [smem:[#allocation6 + $0x14]]  ;;  %s1537_s25 = sld [smem:[#allocation6 + $0x15]]  ;;  %v154_v23 = vstv %s1499_s14  ;;  %v163_v24 = vstv %s1502_s15  ;;  %v147_v32 = vmul.f32 %v1548_v26, %v146_v21  ;;  %v1569_v34 = vmul.f32 %v1557_v29, %v150_v22 }
  0x5d   : > { %v132_v15 = vadd.f32 %v131_v10, %v128_v13  ;;  %s1542_s26 = sld [smem:[#allocation6 + $0x16]]  ;;  %v168_v27 = vstv %s1504_s16  ;;  %v172_v28 = vstv %s1509_s17  ;;  %s1552_s4 = sld [smem:[#allocation6 + $0xf]]  ;;  %v1572_v35 = vmul.f32 %v1560_v30, %v154_v23 }
  0x5e   : > { %s1554_s27 = sld [smem:[#allocation6 + $0x17]]  ;;  %s1564_s28 = sld [smem:[#allocation6 + $0x10]]  ;;  %v164_v36 = vmul.f32 %v163_v24, %v1487_v4  ;;  %v158_v37 = vstv %s1512_s18  ;;  %v165_v38 = vstv %s1514_s19  ;;  %v169_v39 = vmul.f32 %v1494_v7, %v168_v27 }
  0x5f   : > { %v136_v18 = vadd.f32 %v135_v14, %v132_v15  ;;  %s1566_s2 = sld [smem:[#allocation6 + $0x11]]  ;;  %s1575_s29 = sld [smem:[#allocation6 + $0x18]]  ;;  %v1583_v40 = vmul.f32 %v1507_v12, %v172_v28  ;;  %v176_v41 = vstv %s1517_s0  ;;  %v180_v45 = vstv %s1519_s20 }
  0x60   : > { %s1577_s30 = sld [smem:[#allocation6 + $0x1b]]  ;;  %s1585_s6 = sld [smem:[#allocation6 + $0x19]]  ;;  %v203_v43 = vstv %s1523_s21  ;;  %v184_v46 = vstv %s1521_s1  ;;  %v166_v50 = vadd.f32 %v165_v38, %v164_v36  ;;  %v1612_v53 = vmul.f32 %v1526_v17, %v176_v41 }
  0x61   : > { %v140_v33 = vadd.f32 %v139_v19, %v136_v18  ;;  %s1587_s7 = sld [smem:[#allocation7 + $0x3]]  ;;  %v201_v42 = vstv %s1528_s22  ;;  %v206_v44 = vstv %s1530_s23  ;;  %s1593_s8 = sld [smem:[#allocation6 + $0x1c]]  ;;  %v1617_v57 = vmul.f32 %v1545_v25, %v180_v45 }
  0x62   : > { %s1595_s9 = sld [smem:[#allocation6 + $0x1d]]  ;;  %v202_v47 = vmul.f32 %v201_v42, %v1487_v4  ;;  %v207_v48 = vmul.f32 %v1494_v7, %v206_v44  ;;  %s1601_s11 = sld [smem:[#allocation6 + $0x1a]]  ;;  %v210_v51 = vstv %s1535_s24  ;;  %v214_v52 = vstv %s1537_s25 }
  0x63   : > { %s1603_s12 = sld [smem:[#allocation6 + $0x1e]]  ;;  %v144_v49 = vadd.f32 %v143_v31, %v140_v33  ;;  %s1607_s13 = sld [smem:[#allocation6 + $0x1f]]  ;;  %v211_v55 = vmul.f32 %v1507_v12, %v210_v51  ;;  %v218_v56 = vstv %s1542_s26  ;;  %v1620_v58 = vmul.f32 %v1548_v26, %v184_v46 }
  0x64   : > { %s1609_s14 = sld [smem:[#allocation6 + $0x20]]  ;;  %v204_v54 = vadd.f32 %v203_v43, %v202_v47  ;;  %v188_v59 = vstv %s1552_s4  ;;  %v222_v60 = vstv %s1554_s27  ;;  %s1624_s15 = sld [smem:[#allocation6 + $0x21]]  ;;  %v192_v61 = vstv %s1564_s28 }
  0x65   : > { %v196_v62 = vstv %s1566_s2  ;;  %v215_v0 = vmul.f32 %v1526_v17, %v214_v52  ;;  %s1629_s16 = sld [smem:[#allocation6 + $0x22]]  ;;  %s1631_s17 = sld [smem:[#allocation6 + $0x23]]  ;;  %v1633_v5 = vadd.f32 %v147_v32, %v144_v49  ;;  %v1635_v6 = vadd.f32 %v169_v39, %v166_v50 }
  0x66   : > { %v208_v63 = vadd.f32 %v207_v48, %v204_v54  ;;  %v219_v8 = vmul.f32 %v1545_v25, %v218_v56  ;;  %v239_v9 = vstv %s1577_s30  ;;  %s1639_s19 = sld [smem:[#allocation7 + $0x4]]  ;;  %v223_v11 = vmul.f32 %v1548_v26, %v222_v60  ;;  %s1646_s20 = sld [smem:[#allocation6 + $0x25]] }
  0x67   : > { %s1641_s0 = sld [smem:[#allocation6 + $0x24]]  ;;  %v226_v13 = vstv %s1575_s29  ;;  %v241_v14 = vstv %s1587_s7  ;;  %s1648_s1 = sld [smem:[#allocation6 + $0x26]]  ;;  %v230_v15 = vstv %s1585_s6  ;;  %v240_v16 = vmul.f32 %v239_v9, %v1487_v4 }
  0x68   : > { %v212_v10 = vadd.f32 %v211_v55, %v208_v63  ;;  %v244_v18 = vstv %s1593_s8  ;;  %v248_v19 = vstv %s1595_s9  ;;  %s1654_s21 = sld [smem:[#allocation6 + $0x27]]  ;;  %v234_v22 = vstv %s1601_s11  ;;  %s1662_s22 = sld [smem:[#allocation6 + $0x28]] }
  0x69   : > { %v245_v23 = vmul.f32 %v1494_v7, %v244_v18  ;;  %v252_v24 = vstv %s1603_s12  ;;  %v242_v27 = vadd.f32 %v241_v14, %v240_v16  ;;  %v249_v28 = vmul.f32 %v1507_v12, %v248_v19  ;;  %s1667_s23 = sld [smem:[#allocation6 + $0x29]]  ;;  %s1674_s24 = sld [smem:[#allocation6 + $0x2a]] }
  0x6a   : > { %v216_v21 = vadd.f32 %v215_v0, %v212_v10  ;;  %v256_v31 = vstv %s1607_s13  ;;  %v260_v32 = vstv %s1609_s14  ;;  %v1670_v33 = vmul.f32 %v1557_v29, %v188_v59  ;;  %s1679_s25 = sld [smem:[#allocation6 + $0x2b]]  ;;  %s1681_s26 = sld [smem:[#allocation6 + $0x2d]] }
  0x6b   : > { %v227_v38 = vmul.f32 %v1557_v29, %v226_v13  ;;  %v231_v39 = vmul.f32 %v1560_v30, %v230_v15  ;;  %v235_v41 = vmul.f32 %v1657_v20, %v234_v22  ;;  %v246_v42 = vadd.f32 %v245_v23, %v242_v27  ;;  %s1686_s4 = sld [smem:[#allocation6 + $0x2c]]  ;;  %s1688_s27 = sld [smem:[#allocation7 + $0x5]] }
  0x6c   : > { %v220_v36 = vadd.f32 %v219_v8, %v216_v21  ;;  %v253_v43 = vmul.f32 %v1526_v17, %v252_v24  ;;  %v257_v44 = vmul.f32 %v1545_v25, %v256_v31  ;;  %v261_v46 = vmul.f32 %v1548_v26, %v260_v32  ;;  %s1693_s29 = sld [smem:[#allocation6 + $0x2e]]  ;;  %s1695_s30 = sld [smem:[#allocation6 + $0x2f]] }
  0x6d   : > { %v264_v47 = vstv %s1624_s15  ;;  %v268_v48 = vstv %s1629_s16  ;;  %v250_v49 = vadd.f32 %v249_v28, %v246_v42  ;;  %v272_v50 = vstv %s1631_s17  ;;  %s1700_s6 = sld [smem:[#allocation6 + $0x30]]  ;;  %s1705_s7 = sld [smem:[#allocation6 + $0x31]] }
  0x6e   : > { %v224_v45 = vadd.f32 %v223_v11, %v220_v36  ;;  %v277_v51 = vstv %s1641_s0  ;;  %v279_v52 = vstv %s1639_s19  ;;  %v282_v56 = vstv %s1646_s20  ;;  %s1707_s8 = sld [smem:[#allocation6 + $0x32]]  ;;  %s1714_s9 = sld [smem:[#allocation6 + $0x33]] }
  0x6f   : > { %v278_v55 = vmul.f32 %v277_v51, %v1487_v4  ;;  %v286_v59 = vstv %s1648_s1  ;;  %v254_v60 = vadd.f32 %v253_v43, %v250_v49  ;;  %v265_v63 = vmul.f32 %v1557_v29, %v264_v47  ;;  %s1719_s11 = sld [smem:[#allocation6 + $0x34]]  ;;  %s1721_s12 = sld [smem:[#allocation6 + $0x35]] }
  0x70   : > { %v228_v54 = vadd.f32 %v227_v38, %v224_v45  ;;  %v283_v0 = vmul.f32 %v1494_v7, %v282_v56  ;;  %v290_v8 = vstv %s1654_s21  ;;  %v287_v11 = vmul.f32 %v1507_v12, %v286_v59  ;;  %s1727_s13 = sld [smem:[#allocation7 + $0x6]]  ;;  %s1734_s15 = sld [smem:[#allocation6 + $0x37]] }
  0x71   : > { %v280_v10 = vadd.f32 %v279_v52, %v278_v55  ;;  %v294_v13 = vstv %s1662_s22  ;;  %v258_v14 = vadd.f32 %v257_v44, %v254_v60  ;;  %v269_v15 = vmul.f32 %v1560_v30, %v268_v48  ;;  %s1729_s14 = sld [smem:[#allocation6 + $0x36]]  ;;  %s1736_s16 = sld [smem:[#allocation6 + $0x38]] }
  0x72   : > { %v232_v9 = vadd.f32 %v231_v39, %v228_v54  ;;  %v273_v16 = vmul.f32 %v1657_v20, %v272_v50  ;;  %v298_v18 = vstv %s1667_s23  ;;  %v291_v21 = vmul.f32 %v1526_v17, %v290_v8  ;;  %s1741_s17 = sld [smem:[#allocation6 + $0x39]]  ;;  %s1743_s19 = sld [smem:[#allocation6 + $0x3a]] }
  0x73   : > { %v284_v19 = vadd.f32 %v283_v0, %v280_v10  ;;  %v295_v22 = vmul.f32 %v1545_v25, %v294_v13  ;;  %v302_v23 = vstv %s1674_s24  ;;  %v262_v27 = vadd.f32 %v261_v46, %v258_v14  ;;  %s1750_s0 = sld [smem:[#allocation6 + $0x3b]]  ;;  %s1758_s20 = sld [smem:[#allocation6 + $0x3f]] }
  0x74   : > { %v1723_v24 = vadd.f32 %v235_v41, %v232_v9  ;;  %v299_v28 = vmul.f32 %v1548_v26, %v298_v18  ;;  %v315_v31 = vstv %s1681_s26  ;;  %v306_v36 = vstv %s1679_s25  ;;  %s1763_s1 = sld [smem:[#allocation6 + $0x3c]]  ;;  %s1765_s21 = sld [smem:[#allocation6 + $0x3d]] }
  0x75   : > { %v288_v32 = vadd.f32 %v287_v11, %v284_v19  ;;  %v310_v38 = vstv %s1686_s4  ;;  %v316_v39 = vmul.f32 %v315_v31, %v1487_v4  ;;  %v266_v41 = vadd.f32 %v265_v63, %v262_v27  ;;  %s1771_s22 = sld [smem:[#allocation6 + $0x3e]]  ;;  %s1773_s23 = sld [smem:[#allocation7 + $0x7]] }
  0x76   : > { %v317_v42 = vstv %s1688_s27  ;;  %v320_v43 = vstv %s1693_s29  ;;  %v324_v44 = vstv %s1695_s30  ;;  %v328_v50 = vstv %s1700_s6  ;;  %s1777_s24 = sld [smem:[#allocation6 + $0x40]]  ;;  %s1779_s25 = sld [smem:[#allocation6 + $0x41]] }
  0x77   : > { %v292_v45 = vadd.f32 %v291_v21, %v288_v32  ;;  %v318_v46 = vadd.f32 %v317_v42, %v316_v39  ;;  %v321_v47 = vmul.f32 %v1494_v7, %v320_v43  ;;  %v325_v48 = vmul.f32 %v1507_v12, %v324_v44  ;;  %s1785_s26 = sld [smem:[#allocation6 + $0x42]]  ;;  %s1788_s4 = sld [smem:[#allocation6 + $0x43]] }
  0x78   : > { %v270_v49 = vadd.f32 %v269_v15, %v266_v41  ;;  %v332_v51 = vstv %s1705_s7  ;;  %v336_v52 = vstv %s1707_s8  ;;  %v303_v55 = vmul.f32 %v1557_v29, %v302_v23  ;;  %s1795_s27 = sld [smem:[#allocation6 + $0x44]]  ;;  %s1797_s29 = sld [smem:[#allocation6 + $0x45]] }
  0x79   : > { %v296_v54 = vadd.f32 %v295_v22, %v292_v45  ;;  %v322_v56 = vadd.f32 %v321_v47, %v318_v46  ;;  %v329_v59 = vmul.f32 %v1526_v17, %v328_v50  ;;  %v307_v60 = vmul.f32 %v1560_v30, %v306_v36  ;;  %s1806_s30 = sld [smem:[#allocation6 + $0x46]]  ;;  %s1808_s6 = sld [smem:[#allocation6 + $0x48]] }
  0x7a   : > { %v311_v63 = vmul.f32 %v1657_v20, %v310_v38  ;;  %v333_v0 = vmul.f32 %v1545_v25, %v332_v51  ;;  %v340_v8 = vstv %s1714_s9  ;;  %v1760_v9 = vadd.f32 %v273_v16, %v270_v49  ;;  %s1812_s7 = sld [smem:[#allocation6 + $0x47]]  ;;  %s1814_s8 = sld [smem:[#allocation7 + $0x8]] }
  0x7b   : > { %v300_v10 = vadd.f32 %v299_v28, %v296_v54  ;;  %v326_v11 = vadd.f32 %v325_v48, %v322_v56  ;;  %v337_v13 = vmul.f32 %v1548_v26, %v336_v52  ;;  %v341_v14 = vmul.f32 %v1557_v29, %v340_v8  ;;  %s1822_s9 = sld [smem:[#allocation6 + $0x49]] }
  0x7c   : > { %v344_v15 = vstv %s1719_s11  ;;  %v353_v18 = vstv %s1729_s14  ;;  %v355_v19 = vstv %s1727_s13  ;;  %v348_v22 = vstv %s1721_s12  ;;  %s1824_s11 = sld [smem:[#allocation6 + $0x4a]]  ;;  %s1828_s12 = sld [smem:[#allocation6 + $0x4b]] }
  0x7d   : > { %v304_v16 = vadd.f32 %v303_v55, %v300_v10  ;;  %v330_v21 = vadd.f32 %v329_v59, %v326_v11  ;;  %v354_v23 = vmul.f32 %v353_v18, %v1487_v4  ;;  %v358_v27 = vstv %s1734_s15  ;;  %s1833_s13 = sld [smem:[#allocation6 + $0x4c]]  ;;  %s1835_s14 = sld [smem:[#allocation6 + $0x4d]] }
  0x7e   : > { %v362_v28 = vstv %s1736_s16  ;;  %v366_v31 = vstv %s1741_s17  ;;  %v370_v32 = vstv %s1743_s19  ;;  %v359_v41 = vmul.f32 %v1494_v7, %v358_v27  ;;  %s1847_s15 = sld [smem:[#allocation6 + $0x4e]]  ;;  %s1849_s16 = sld [smem:[#allocation6 + $0x4f]] }
  0x7f   : > { %v308_v36 = vadd.f32 %v307_v60, %v304_v16  ;;  %v334_v38 = vadd.f32 %v333_v0, %v330_v21  ;;  %v356_v39 = vadd.f32 %v355_v19, %v354_v23  ;;  %v732_v42 = vmax.f32 %v1760_v9, %v1723_v24  ;;  %s1854_s17 = sld [smem:[#allocation7 + $0x9]] }
  0x80   : > { %v345_v43 = vmul.f32 %v1560_v30, %v344_v15  ;;  %v363_v44 = vmul.f32 %v1507_v12, %v362_v28  ;;  %v374_v45 = vstv %s1750_s0  ;;  %v367_v49 = vmul.f32 %v1526_v17, %v366_v31  ;;  %s1856_s19 = sld [smem:[#allocation6 + $0x51]]  ;;  %s1861_s0 = sld [smem:[#allocation6 + $0x50]] }
  0x81   : > { %v1799_v46 = vadd.f32 %v311_v63, %v308_v36  ;;  %v338_v47 = vadd.f32 %v337_v13, %v334_v38  ;;  %v360_v48 = vadd.f32 %v359_v41, %v356_v39  ;;  %v349_v50 = vmul.f32 %v1657_v20, %v348_v22  ;;  %s1189_s18 = sld [smem:[#allocation11 + $0x1]] }
  0x82   : > { %v371_v51 = vmul.f32 %v1545_v25, %v370_v32  ;;  %v375_v52 = vmul.f32 %v1548_v26, %v374_v45  ;;  %v391_v54 = vstv %s1758_s20  ;;  %v378_v59 = vstv %s1763_s1  ;;  %s1863_s20 = sld [smem:[#allocation6 + $0x52]]  ;;  %s1868_s1 = sld [smem:[#allocation6 + $0x53]] }
  0x83   : > { %v342_v55 = vadd.f32 %v341_v14, %v338_v47  ;;  %v364_v56 = vadd.f32 %v363_v44, %v360_v48  ;;  %v382_v60 = vstv %s1765_s21  ;;  %v1817_v63 = vmax.f32 %v732_v42, %v1799_v46  ;;  %s1870_s21 = sld [smem:[#allocation6 + $0x54]] }
  0x84   : > { %v386_v0 = vstv %s1771_s22  ;;  %v392_v8 = vmul.f32 %v391_v54, %v1487_v4  ;;  %v393_v10 = vstv %s1773_s23  ;;  %v396_v14 = vstv %s1777_s24  ;;  %s1877_s22 = sld [smem:[#allocation6 + $0x55]]  ;;  %s1879_s23 = sld [smem:[#allocation6 + $0x56]] }
  0x85   : > { %v346_v11 = vadd.f32 %v345_v43, %v342_v55  ;;  %v368_v13 = vadd.f32 %v367_v49, %v364_v56  ;;  %v400_v15 = vstv %s1779_s25  ;;  %v397_v19 = vmul.f32 %v1494_v7, %v396_v14  ;;  %s1888_s24 = sld [smem:[#allocation6 + $0x57]]  ;;  %s1894_s25 = sld [smem:[#allocation6 + $0x58]] }
  0x86   : > { %v394_v18 = vadd.f32 %v393_v10, %v392_v8  ;;  %v401_v16 = vmul.f32 %v1507_v12, %v400_v15  ;;  %v404_v21 = vstv %s1785_s26  ;;  %v379_v23 = vmul.f32 %v1557_v29, %v378_v59  ;;  %s1896_s26 = sld [smem:[#allocation6 + $0x59]] }
  0x87   : > { %v372_v22 = vadd.f32 %v371_v51, %v368_v13  ;;  %v383_v27 = vmul.f32 %v1560_v30, %v382_v60  ;;  %v408_v28 = vstv %s1788_s4  ;;  %v405_v32 = vmul.f32 %v1526_v17, %v404_v21  ;;  %s1901_s4 = sld [smem:[#allocation7 + $0xa]] }
  0x88   : > { %v398_v31 = vadd.f32 %v397_v19, %v394_v18  ;;  %v412_v36 = vstv %s1795_s27  ;;  %v416_v38 = vstv %s1797_s29  ;;  %v1843_v39 = vadd.f32 %v349_v50, %v346_v11  ;;  %s1903_s27 = sld [smem:[#allocation6 + $0x5a]]  ;;  %s1908_s29 = sld [smem:[#allocation6 + $0x5b]] }
  0x89   : > { %v376_v41 = vadd.f32 %v375_v52, %v372_v22  ;;  %v387_v42 = vmul.f32 %v1657_v20, %v386_v0  ;;  %v409_v43 = vmul.f32 %v1545_v25, %v408_v28  ;;  %v413_v45 = vmul.f32 %v1548_v26, %v412_v36 }
  0x8a   : > { %v402_v44 = vadd.f32 %v401_v16, %v398_v31  ;;  %v417_v47 = vmul.f32 %v1557_v29, %v416_v38  ;;  %v429_v48 = vstv %s1808_s6  ;;  %v420_v50 = vstv %s1806_s30  ;;  %s1910_s30 = sld [smem:[#allocation6 + $0x5c]]  ;;  %s1915_s6 = sld [smem:[#allocation6 + $0x5d]] }
  0x8b   : > { %v380_v49 = vadd.f32 %v379_v23, %v376_v41  ;;  %v424_v51 = vstv %s1812_s7  ;;  %v430_v52 = vmul.f32 %v429_v48, %v1487_v4  ;;  %v431_v55 = vstv %s1814_s8  ;;  %s1920_s7 = sld [smem:[#allocation6 + $0x5e]]  ;;  %s1922_s8 = sld [smem:[#allocation6 + $0x5f]] }
  0x8c   : > { %v406_v54 = vadd.f32 %v405_v32, %v402_v44  ;;  %v434_v56 = vstv %s1822_s9  ;;  %v438_v59 = vstv %s1824_s11  ;;  %v442_v13 = vstv %s1828_s12  ;;  %s1932_s9 = sld [smem:[#allocation6 + $0x60]]  ;;  %s1936_s11 = sld [smem:[#allocation6 + $0x61]] }
  0x8d   : > { %v384_v60 = vadd.f32 %v383_v27, %v380_v49  ;;  %v432_v0 = vadd.f32 %v431_v55, %v430_v52  ;;  %v435_v8 = vmul.f32 %v1494_v7, %v434_v56  ;;  %v439_v10 = vmul.f32 %v1507_v12, %v438_v59  ;;  %s1938_s12 = sld [smem:[#allocation6 + $0x62]] }
  0x8e   : > { %v410_v11 = vadd.f32 %v409_v43, %v406_v54  ;;  %v446_v14 = vstv %s1833_s13  ;;  %v450_v15 = vstv %s1835_s14  ;;  %v1883_v18 = vadd.f32 %v1583_v40, %v1635_v6  ;;  %s1945_s13 = sld [smem:[#allocation7 + $0xb]] }
  0x8f   : > { %v734_v19 = vmax.f32 %v1817_v63, %v1843_v39  ;;  %v436_v16 = vadd.f32 %v435_v8, %v432_v0  ;;  %v443_v21 = vmul.f32 %v1526_v17, %v442_v13  ;;  %v1890_v22 = vadd.f32 %v387_v42, %v384_v60  ;;  %s1947_s14 = sld [smem:[#allocation6 + $0x63]] }
  0x90   : > { %v414_v23 = vadd.f32 %v413_v45, %v410_v11  ;;  %v421_v27 = vmul.f32 %v1560_v30, %v420_v50  ;;  %v425_v28 = vmul.f32 %v1657_v20, %v424_v51  ;;  %v447_v6 = vmul.f32 %v1545_v25, %v446_v14 }
  0x91   : > { %v440_v40 = vadd.f32 %v439_v10, %v436_v16  ;;  %v451_v63 = vmul.f32 %v1548_v26, %v450_v15  ;;  %v454_v31 = vstv %s1847_s15  ;;  %v458_v36 = vstv %s1849_s16  ;;  %s1951_s15 = sld [smem:[#allocation6 + $0x64]]  ;;  %s1953_s16 = sld [smem:[#allocation6 + $0x65]] }
  0x92   : > { %v418_v32 = vadd.f32 %v417_v47, %v414_v23  ;;  %v467_v38 = vstv %s1856_s19  ;;  %v469_v41 = vstv %s1854_s17  ;;  %v462_v43 = vstv %s1861_s0  ;;  %s1959_s17 = sld [smem:[#allocation6 + $0x66]]  ;;  %s1961_s19 = sld [smem:[#allocation6 + $0x67]] }
  0x93   : > { %v444_v42 = vadd.f32 %v443_v21, %v440_v40  ;;  %v468_v44 = vmul.f32 %v467_v38, %v1487_v4  ;;  %v472_v45 = vstv %s1863_s20  ;;  %v476_v47 = vstv %s1868_s1  ;;  %s1970_s0 = sld [smem:[#allocation6 + $0x68]]  ;;  %s1979_s20 = sld [smem:[#allocation6 + $0x6c]] }
  0x94   : > { %v422_v48 = vadd.f32 %v421_v27, %v418_v32  ;;  %v473_v49 = vmul.f32 %v1494_v7, %v472_v45  ;;  %v480_v50 = vstv %s1870_s21  ;;  %v455_v52 = vmul.f32 %v1557_v29, %v454_v31  ;;  %s1983_s1 = sld [smem:[#allocation6 + $0x69]]  ;;  %s1985_s21 = sld [smem:[#allocation6 + $0x6a]] }
  0x95   : > { %v448_v51 = vadd.f32 %v447_v6, %v444_v42  ;;  %v470_v54 = vadd.f32 %v469_v41, %v468_v44  ;;  %v477_v55 = vmul.f32 %v1507_v12, %v476_v47  ;;  %v1927_v56 = vmax.f32 %v734_v19, %v1890_v22 }
  0x96   : > { %v459_v59 = vmul.f32 %v1560_v30, %v458_v36  ;;  %v484_v60 = vstv %s1877_s22  ;;  %v488_v0 = vstv %s1879_s23  ;;  %v463_v10 = vmul.f32 %v1657_v20, %v462_v43  ;;  %s1991_s22 = sld [smem:[#allocation6 + $0x6b]]  ;;  %s1993_s23 = sld [smem:[#allocation7 + $0xc]] }
  0x97   : > { %v452_v8 = vadd.f32 %v451_v63, %v448_v51  ;;  %v474_v11 = vadd.f32 %v473_v49, %v470_v54  ;;  %v481_v13 = vmul.f32 %v1526_v17, %v480_v50  ;;  %v1940_v14 = vadd.f32 %v425_v28, %v422_v48 }
  0x98   : > { %v485_v15 = vmul.f32 %v1545_v25, %v484_v60  ;;  %v489_v19 = vmul.f32 %v1548_v26, %v488_v0  ;;  %v492_v16 = vstv %s1888_s24  ;;  %v496_v27 = vstv %s1894_s25  ;;  %s1997_s24 = sld [smem:[#allocation6 + $0x6d]]  ;;  %s1999_s25 = sld [smem:[#allocation6 + $0x6e]] }
  0x99   : > { %v456_v21 = vadd.f32 %v455_v52, %v452_v8  ;;  %v478_v23 = vadd.f32 %v477_v55, %v474_v11  ;;  %v500_v40 = vstv %s1896_s26  ;;  %v505_v28 = vstv %s1903_s27  ;;  %s2005_s26 = sld [smem:[#allocation6 + $0x6f]]  ;;  %s2016_s27 = sld [smem:[#allocation6 + $0x71]] }
  0x9a   : > { %v507_v6 = vstv %s1901_s4  ;;  %v510_v63 = vstv %s1908_s29  ;;  %v514_v31 = vstv %s1910_s30  ;;  %v506_v38 = vmul.f32 %v505_v28, %v1487_v4  ;;  %s2008_s4 = sld [smem:[#allocation6 + $0x70]]  ;;  %s2018_s29 = sld [smem:[#allocation6 + $0x72]] }
  0x9b   : > { %v460_v32 = vadd.f32 %v459_v59, %v456_v21  ;;  %v482_v36 = vadd.f32 %v481_v13, %v478_v23  ;;  %v511_v41 = vmul.f32 %v1494_v7, %v510_v63  ;;  %v736_v42 = vmax.f32 %v1927_v56, %v1940_v14  ;;  %s2027_s30 = sld [smem:[#allocation6 + $0x75]] }
  0x9c   : > { %v518_v43 = vstv %s1915_s6  ;;  %v522_v44 = vstv %s1920_s7  ;;  %v526_v45 = vstv %s1922_s8  ;;  %v493_v49 = vmul.f32 %v1557_v29, %v492_v16  ;;  %s2035_s6 = sld [smem:[#allocation7 + $0xd]]  ;;  %s2037_s7 = sld [smem:[#allocation6 + $0x76]] }
  0x9d   : > { %v486_v48 = vadd.f32 %v485_v15, %v482_v36  ;;  %v508_v47 = vadd.f32 %v507_v6, %v506_v38  ;;  %v515_v50 = vmul.f32 %v1507_v12, %v514_v31  ;;  %v1974_v51 = vadd.f32 %v463_v10, %v460_v32  ;;  %s2041_s8 = sld [smem:[#allocation6 + $0x77]] }
  0x9e   : > { %v497_v52 = vmul.f32 %v1560_v30, %v496_v27  ;;  %v501_v54 = vmul.f32 %v1657_v20, %v500_v40  ;;  %v519_v55 = vmul.f32 %v1526_v17, %v518_v43  ;;  %v523_v60 = vmul.f32 %v1545_v25, %v522_v44 }
  0x9f   : > { %v490_v56 = vadd.f32 %v489_v19, %v486_v48  ;;  %v512_v59 = vadd.f32 %v511_v41, %v508_v47  ;;  %v527_v0 = vmul.f32 %v1548_v26, %v526_v45  ;;  %v530_v8 = vstv %s1932_s9  ;;  %s2043_s9 = sld [smem:[#allocation6 + $0x78]] }
  0xa0   : > { %v534_v10 = vstv %s1936_s11  ;;  %v543_v11 = vstv %s1947_s14  ;;  %v545_v13 = vstv %s1945_s13  ;;  %v538_v16 = vstv %s1938_s12  ;;  %s2048_s11 = sld [smem:[#allocation6 + $0x73]]  ;;  %s2050_s12 = sld [smem:[#allocation6 + $0x74]] }
  0xa1   : > { %v494_v15 = vadd.f32 %v493_v49, %v490_v56  ;;  %v516_v19 = vadd.f32 %v515_v50, %v512_v59  ;;  %v544_v21 = vmul.f32 %v543_v11, %v1487_v4  ;;  %v548_v23 = vstv %s1951_s15  ;;  %s2054_s13 = sld [smem:[#allocation6 + $0x79]]  ;;  %s2056_s14 = sld [smem:[#allocation6 + $0x7a]] }
  0xa2   : > { %v552_v27 = vstv %s1953_s16  ;;  %v556_v40 = vstv %s1959_s17  ;;  %v560_v28 = vstv %s1961_s19  ;;  %v549_v32 = vmul.f32 %v1494_v7, %v548_v23  ;;  %s2066_s15 = sld [smem:[#allocation6 + $0x7b]]  ;;  %s2068_s16 = sld [smem:[#allocation6 + $0x7c]] }
  0xa3   : > { %v498_v6 = vadd.f32 %v497_v52, %v494_v15  ;;  %v520_v63 = vadd.f32 %v519_v55, %v516_v19  ;;  %v546_v31 = vadd.f32 %v545_v13, %v544_v21  ;;  %v2011_v36 = vmax.f32 %v736_v42, %v1974_v51  ;;  %s2073_s17 = sld [smem:[#allocation7 + $0xe]] }
  0xa4   : > { %v531_v38 = vmul.f32 %v1557_v29, %v530_v8  ;;  %v553_v41 = vmul.f32 %v1507_v12, %v552_v27  ;;  %v564_v43 = vstv %s1970_s0  ;;  %v535_v45 = vmul.f32 %v1560_v30, %v534_v10  ;;  %s2075_s19 = sld [smem:[#allocation6 + $0x7e]]  ;;  %s2081_s0 = sld [smem:[#allocation6 + $0x7f]] }
  0xa5   : > { %v524_v44 = vadd.f32 %v523_v60, %v520_v63  ;;  %v550_v48 = vadd.f32 %v549_v32, %v546_v31  ;;  %v557_v42 = vmul.f32 %v1526_v17, %v556_v40  ;;  %v2022_v49 = vadd.f32 %v501_v54, %v498_v6 }
  0xa6   : > { %v539_v47 = vmul.f32 %v1657_v20, %v538_v16  ;;  %v561_v50 = vmul.f32 %v1545_v25, %v560_v28  ;;  %v581_v52 = vstv %s1979_s20  ;;  %v565_v59 = vmul.f32 %v1548_v26, %v564_v43  ;;  %s2083_s20 = sld [smem:[#allocation6 + $0x80]] }
  0xa7   : > { %v528_v55 = vadd.f32 %v527_v0, %v524_v44  ;;  %v554_v56 = vadd.f32 %v553_v41, %v550_v48  ;;  %v568_v60 = vstv %s1983_s1  ;;  %v572_v8 = vstv %s1985_s21  ;;  %s2088_s1 = sld [smem:[#allocation6 + $0x7d]]  ;;  %s2093_s21 = sld [smem:[#allocation6 + $0x81]] }
  0xa8   : > { %v576_v10 = vstv %s1991_s22  ;;  %v582_v54 = vmul.f32 %v581_v52, %v1487_v4  ;;  %v583_v11 = vstv %s1993_s23  ;;  %v586_v19 = vstv %s1997_s24  ;;  %s2097_s22 = sld [smem:[#allocation6 + $0x82]]  ;;  %s2107_s23 = sld [smem:[#allocation6 + $0x83]] }
  0xa9   : > { %v532_v13 = vadd.f32 %v531_v38, %v528_v55  ;;  %v558_v15 = vadd.f32 %v557_v42, %v554_v56  ;;  %v590_v16 = vstv %s1999_s25  ;;  %v587_v21 = vmul.f32 %v1494_v7, %v586_v19  ;;  %s2114_s24 = sld [smem:[#allocation7 + $0xf]] }
  0xaa   : > { %v584_v0 = vadd.f32 %v583_v11, %v582_v54  ;;  %v591_v23 = vmul.f32 %v1507_v12, %v590_v16  ;;  %v594_v27 = vstv %s2005_s26  ;;  %v569_v6 = vmul.f32 %v1557_v29, %v568_v60  ;;  %s2116_s25 = sld [smem:[#allocation6 + $0x87]]  ;;  %s2120_s26 = sld [smem:[#allocation6 + $0x84]] }
  0xab   : > { %v536_v40 = vadd.f32 %v535_v45, %v532_v13  ;;  %v562_v28 = vadd.f32 %v561_v50, %v558_v15  ;;  %v598_v63 = vstv %s2008_s4  ;;  %v595_v32 = vmul.f32 %v1526_v17, %v594_v27  ;;  %s2122_s4 = sld [smem:[#allocation6 + $0x88]] }
  0xac   : > { %v588_v31 = vadd.f32 %v587_v21, %v584_v0  ;;  %v602_v38 = vstv %s2016_s27  ;;  %v606_v41 = vstv %s2018_s29  ;;  %v178_v43 = vadd.f32 %v1612_v53, %v1883_v18  ;;  %s2128_s27 = sld [smem:[#allocation6 + $0x89]]  ;;  %s2130_s29 = sld [smem:[#allocation6 + $0x8a]] }
  0xad   : > { %v738_v44 = vmax.f32 %v2011_v36, %v2022_v49  ;;  %v566_v45 = vadd.f32 %v565_v59, %v562_v28  ;;  %v573_v48 = vmul.f32 %v1560_v30, %v572_v8  ;;  %v577_v42 = vmul.f32 %v1657_v20, %v576_v10 }
  0xae   : > { %v592_v50 = vadd.f32 %v591_v23, %v588_v31  ;;  %v599_v52 = vmul.f32 %v1545_v25, %v598_v63  ;;  %v619_v55 = vstv %s2027_s30  ;;  %v2077_v53 = vadd.f32 %v539_v47, %v536_v40  ;;  %s2135_s30 = sld [smem:[#allocation6 + $0x85]] }
  0xaf   : > { %v570_v18 = vadd.f32 %v569_v6, %v566_v45  ;;  %v603_v36 = vmul.f32 %v1548_v26, %v602_v38  ;;  %v607_v56 = vmul.f32 %v1557_v29, %v606_v41  ;;  %v620_v60 = vmul.f32 %v619_v55, %v1487_v4 }
  0xb0   : > { %v596_v59 = vadd.f32 %v595_v32, %v592_v50  ;;  %v621_v8 = vstv %s2035_s6  ;;  %v624_v10 = vstv %s2037_s7  ;;  %v628_v11 = vstv %s2041_s8  ;;  %v1252_v50 = vld [vmem:[%s1484_s10] sm:$0xff]  ;;  %s2140_s6 = sld [smem:[#allocation6 + $0x86]]  ;;  %s2142_s7 = sld [smem:[#allocation6 + $0x8b]] }
  0xb1   : > { %v574_v47 = vadd.f32 %v573_v48, %v570_v18  ;;  %v625_v54 = vmul.f32 %v1494_v7, %v624_v10  ;;  %v632_v13 = vstv %s2043_s9  ;;  %v610_v19 = vstv %s2048_s11  ;;  %v1254_v10 = vld [vmem:[%s1484_s10 + $0x10] sm:$0xff]  ;;  %s2151_s8 = sld [smem:[#allocation6 + $0x8c]]  ;;  %s2160_s9 = sld [smem:[#allocation6 + $0x8d]] }
  0xb2   : > { %v600_v15 = vadd.f32 %v599_v52, %v596_v59  ;;  %v622_v16 = vadd.f32 %v621_v8, %v620_v60  ;;  %v629_v0 = vmul.f32 %v1507_v12, %v628_v11  ;;  %v182_v4 = vadd.f32 %v1617_v57, %v178_v43  ;;  %v1253_v52 = vld [vmem:[%s1484_s10 + $0x8] sm:$0xff]  ;;  %s2167_s11 = sld [smem:[#allocation6 + $0x8e]] }
  0xb3   : > { %v614_v21 = vstv %s2050_s12  ;;  %v636_v23 = vstv %s2054_s13  ;;  %v640_v27 = vstv %s2056_s14  ;;  %v2104_v7 = vmax.f32 %v738_v44, %v2077_v53  ;;  %s2173_s12 = sld [smem:[#allocation6 + $0x8f]] }
  0xb4   : > { %v604_v40 = vadd.f32 %v603_v36, %v600_v15  ;;  %v626_v28 = vadd.f32 %v625_v54, %v622_v16  ;;  %v633_v6 = vmul.f32 %v1526_v17, %v632_v13  ;;  %v2109_v12 = vadd.f32 %v577_v42, %v574_v47 }
  0xb5   : > { %v611_v57 = vmul.f32 %v1560_v30, %v610_v19  ;;  %v637_v63 = vmul.f32 %v1545_v25, %v636_v23  ;;  %v644_v31 = vstv %s2066_s15  ;;  %v641_v38 = vmul.f32 %v1548_v26, %v640_v27 }
  0xb6   : > { %v608_v32 = vadd.f32 %v607_v56, %v604_v40  ;;  %v630_v17 = vadd.f32 %v629_v0, %v626_v28  ;;  %v648_v41 = vstv %s2068_s16  ;;  %v657_v43 = vstv %s2075_s19  ;;  %v1255_v0 = vld [vmem:[%s1484_s10 + $0x18] sm:$0xff] }
  0xb7   : > { %v659_v25 = vstv %s2073_s17  ;;  %v662_v44 = vstv %s2081_s0  ;;  %v666_v45 = vstv %s2083_s20  ;;  %v652_v42 = vstv %s2088_s1 }
  0xb8   : > { %v634_v48 = vadd.f32 %v633_v6, %v630_v17  ;;  %v658_v26 = vmul.f32 %v1252_v50, %v657_v43  ;;  %v663_v55 = vmul.f32 %v1253_v52, %v662_v44  ;;  %v612_v18 = vadd.f32 %v611_v57, %v608_v32 }
  0xb9   : > { %v615_v36 = vmul.f32 %v1657_v20, %v614_v21  ;;  %v645_v56 = vmul.f32 %v1557_v29, %v644_v31  ;;  %v670_v59 = vstv %s2093_s21  ;;  %v667_v47 = vmul.f32 %v1254_v10, %v666_v45  ;;  %v1258_v45 = vld [vmem:[%s1484_s10 + $0x30] sm:$0xff] }
  0xba   : > { %v638_v60 = vadd.f32 %v637_v63, %v634_v48  ;;  %v660_v8 = vadd.f32 %v659_v25, %v658_v26  ;;  %v674_v54 = vstv %s2097_s22  ;;  %v186_v11 = vadd.f32 %v1620_v58, %v182_v4  ;;  %v1256_v4 = vld [vmem:[%s1484_s10 + $0x20] sm:$0xff]  ;;  %v1257_v63 = vld [vmem:[%s1484_s10 + $0x28] sm:$0xff] }
  0xbb   : > { %v740_v29 = vmax.f32 %v2104_v7, %v2109_v12  ;;  %v649_v13 = vmul.f32 %v1560_v30, %v648_v41  ;;  %v653_v15 = vmul.f32 %v1657_v20, %v652_v42  ;;  %v671_v21 = vmul.f32 %v1255_v0, %v670_v59 }
  0xbc   : > { %v642_v19 = vadd.f32 %v641_v38, %v638_v60  ;;  %v664_v16 = vadd.f32 %v663_v55, %v660_v8  ;;  %v678_v23 = vstv %s2107_s23  ;;  %v2155_v58 = vadd.f32 %v615_v36, %v612_v18  ;;  %v1259_v8 = vld [vmem:[%s1484_s10 + $0x38] sm:$0xff]  ;;  %s945_s10 = sld [smem:[#allocation11]] }
  0xbd   : > { %v675_v27 = vmul.f32 %v1256_v4, %v674_v54  ;;  %v695_v30 = vstv %s2116_s25  ;;  %v697_v7 = vstv %s2114_s24  ;;  %v682_v6 = vstv %s2120_s26 }
  0xbe   : > { %v646_v40 = vadd.f32 %v645_v56, %v642_v19  ;;  %v668_v28 = vadd.f32 %v667_v47, %v664_v16  ;;  %v696_v57 = vmul.f32 %v1252_v50, %v695_v30  ;;  %v679_v31 = vmul.f32 %v1257_v63, %v678_v23 }
  0xbf   : > { %v700_v32 = vstv %s2122_s4  ;;  %v704_v17 = vstv %s2128_s27  ;;  %v708_v38 = vstv %s2130_s29  ;;  %v686_v43 = vstv %s2135_s30 }
  0xc0   : > { %v672_v41 = vadd.f32 %v671_v21, %v668_v28  ;;  %v698_v25 = vadd.f32 %v697_v7, %v696_v57  ;;  %v701_v44 = vmul.f32 %v1253_v52, %v700_v32  ;;  %v683_v48 = vmul.f32 %v1258_v45, %v682_v6 }
  0xc1   : > { %v690_v42 = vstv %s2140_s6  ;;  %v705_v26 = vmul.f32 %v1254_v10, %v704_v17  ;;  %v712_v55 = vstv %s2142_s7  ;;  %v650_v50 = vadd.f32 %v649_v13, %v646_v40 }
  0xc2   : > { %v676_v18 = vadd.f32 %v675_v27, %v672_v41  ;;  %v702_v36 = vadd.f32 %v701_v44, %v698_v25  ;;  %v709_v56 = vmul.f32 %v1255_v0, %v708_v38  ;;  %v152_v59 = vadd.f32 %v1569_v34, %v1633_v5 }
  0xc3   : > { %v190_v60 = vadd.f32 %v1670_v33, %v186_v11  ;;  %v193_v52 = vmul.f32 %v1259_v8, %v192_v61  ;;  %v716_v10 = vstv %s2151_s8  ;;  %v687_v54 = vmul.f32 %v1259_v8, %v686_v43 }
  0xc4   : > { %v680_v47 = vadd.f32 %v679_v31, %v676_v18  ;;  %v706_v19 = vadd.f32 %v705_v26, %v702_v36  ;;  %v713_v16 = vmul.f32 %v1256_v4, %v712_v55  ;;  %v741_v13 = vmax.f32 %v740_v29, %v2155_v58 }
  0xc5   : > { %v691_v0 = vmul.f32 %v1657_v20, %v690_v42  ;;  %v720_v21 = vstv %s2160_s9  ;;  %v2185_v34 = vadd.f32 %v653_v15, %v650_v50  ;;  %v717_v11 = vmul.f32 %v1257_v63, %v716_v10  ;;  %v751_v10 = vld [vmem:[#allocation9 + $0x80] sm:$0xff] }
  0xc6   : > { %v684_v5 = vadd.f32 %v683_v48, %v680_v47  ;;  %v710_v33 = vadd.f32 %v709_v56, %v706_v19  ;;  %v156_v23 = vadd.f32 %v1572_v35, %v152_v59  ;;  %v159_v61 = vmul.f32 %v1657_v20, %v158_v37  ;;  %v758_v47 = vld [vmem:[#allocation9 + $0x8] sm:$0xff] }
  0xc7   : > { %v197_v27 = vmul.f32 %v1657_v20, %v196_v62  ;;  %v724_v4 = vstv %s2167_s11  ;;  %v194_v30 = vadd.f32 %v193_v52, %v190_v60  ;;  %v721_v40 = vmul.f32 %v1258_v45, %v720_v21  ;;  %v749_v52 = vld [vmem:[#allocation9] sm:$0xff]  ;;  %v760_v19 = vld [vmem:[#allocation9 + $0x88] sm:$0xff] }
  0xc8   : > { %v688_v7 = vadd.f32 %v687_v54, %v684_v5  ;;  %v714_v29 = vadd.f32 %v713_v16, %v710_v33  ;;  %v728_v28 = vstv %s2173_s12  ;;  %v742_v15 = vmax.f32 %v741_v13, %v2185_v34  ;;  %v770_v16 = vld [vmem:[#allocation9 + $0x10] sm:$0xff]  ;;  %v782_v5 = vld [vmem:[#allocation9 + $0x18] sm:$0xff] }
  0xc9   : > { %v725_v63 = vmul.f32 %v1259_v8, %v724_v4  ;;  %v160_v31 = vadd.f32 %v159_v61, %v156_v23  ;;  %v198_v35 = vadd.f32 %v197_v27, %v194_v30  ;;  %v729_v37 = vmul.f32 %v1657_v20, %v728_v28  ;;  %v784_v4 = vld [vmem:[#allocation9 + $0x98] sm:$0xff] }
  0xca   : > { %v2197_v6 = vadd.f32 %v691_v0, %v688_v7  ;;  %v718_v57 = vadd.f32 %v717_v11, %v714_v29  ;;  %v772_v0 = vld [vmem:[#allocation9 + $0x90] sm:$0xff]  ;;  %v794_v29 = vld [vmem:[#allocation9 + $0x20] sm:$0xff] }
  0xcb   : > { %v731_v41 = vmax.f32 %v160_v31, %v198_v35 }
  0xcc   : > { %v722_v32 = vadd.f32 %v721_v40, %v718_v57  ;;  %v743_v17 = vmax.f32 %v742_v15, %v2197_v6 }
  0xce   : > { %v726_v62 = vadd.f32 %v725_v63, %v722_v32  ;;  %v806_v32 = vld [vmem:[#allocation9 + $0x28] sm:$0xff] }
  0xd0   : > { %v2201_v38 = vadd.f32 %v729_v37, %v726_v62 }
  0xd2   : > { %v744_v43 = vmax.f32 %v743_v17, %v2201_v38 }
  0xd4   : > { %v2204_v25 = vmax.f32 %v744_v43, %v731_v41 }
  0xd6   : > { %v746_v44 = vsub.f32 %v160_v31, %v2204_v25  ;;  %v754_v45 = vsub.f32 %v198_v35, %v2204_v25  ;;  %v766_v48 = vsub.f32 %v1723_v24, %v2204_v25  ;;  %v778_v20 = vsub.f32 %v1760_v9, %v2204_v25  ;;  %v796_v31 = vld [vmem:[#allocation9 + $0xa0] sm:$0xff] }
  0xd7   : > { %v790_v42 = vsub.f32 %v1799_v46, %v2204_v25  ;;  %v802_v36 = vsub.f32 %v1843_v39, %v2204_v25  ;;  %v814_v59 = vsub.f32 %v1890_v22, %v2204_v25  ;;  %v826_v9 = vsub.f32 %v1940_v14, %v2204_v25 }
  0xd8   : > { %v747_v26 = vmul.f32 1.442695, %v746_v44  ;;  %v755_v55 = vmul.f32 1.442695, %v754_v45  ;;  %v767_v50 = vmul.f32 1.442695, %v766_v48  ;;  %v838_v60 = vsub.f32 %v1974_v51, %v2204_v25 }
  0xd9   : > { %v779_v18 = vmul.f32 1.442695, %v778_v20  ;;  %v791_v56 = vmul.f32 1.442695, %v790_v42  ;;  %v803_v24 = vmul.f32 1.442695, %v802_v36  ;;  %v850_v39 = vsub.f32 %v2022_v49, %v2204_v25 }
  0xda   : > { %1218 = vpow2.f32 %v747_v26  ;;  %v815_v46 = vmul.f32 1.442695, %v814_v59  ;;  %v827_v8 = vmul.f32 1.442695, %v826_v9  ;;  %v839_v22 = vmul.f32 1.442695, %v838_v60 }
  0xdb   : > { %1220 = vpow2.f32 %v755_v55  ;;  %v862_v54 = vsub.f32 %v2077_v53, %v2204_v25  ;;  %v851_v13 = vmul.f32 1.442695, %v850_v39  ;;  %v874_v49 = vsub.f32 %v2109_v12, %v2204_v25  ;;  %v808_v45 = vld [vmem:[#allocation9 + $0xa8] sm:$0xff]  ;;  %v818_v20 = vld [vmem:[#allocation9 + $0x30] sm:$0xff] }
  0xdc   : > { %1222 = vpow2.f32 %v767_v50  ;;  %v886_v27 = vsub.f32 %v2155_v58, %v2204_v25  ;;  %v898_v12 = vsub.f32 %v2185_v34, %v2204_v25  ;;  %v910_v44 = vsub.f32 %v2197_v6, %v2204_v25 }
  0xdd   : > { %1224 = vpow2.f32 %v779_v18  ;;  %v863_v40 = vmul.f32 1.442695, %v862_v54  ;;  %v875_v37 = vmul.f32 1.442695, %v874_v49  ;;  %v922_v36 = vsub.f32 %v2201_v38, %v2204_v25  ;;  %v844_v25 = vld [vmem:[#allocation9 + $0xc0] sm:$0xff] }
  0xde   : > { %1226 = vpow2.f32 %v791_v56  ;;  %v887_v42 = vmul.f32 1.442695, %v886_v27  ;;  %v820_v56 = vld [vmem:[#allocation9 + $0xb0] sm:$0xff]  ;;  %v899_v9 = vmul.f32 1.442695, %v898_v12 }
  0xdf   : > { %1228 = vpow2.f32 %v803_v24  ;;  %v830_v24 = vld [vmem:[#allocation9 + $0x38] sm:$0xff]  ;;  %v866_v27 = vld [vmem:[#allocation9 + $0x50] sm:$0xff] }
  0xe0   : > { %1230 = vpow2.f32 %v815_v46 }
  0xe1   : > { %1232 = vpow2.f32 %v827_v8 }
  0xe2   : > { %1234 = vpow2.f32 %v839_v22  ;;  %v911_v22 = vmul.f32 1.442695, %v910_v44  ;;  %v890_v44 = vld [vmem:[#allocation9 + $0x60] sm:$0xff] }
  0xe3   : > { %1236 = vpow2.f32 %v851_v13 }
  0xe4   : > { %v1219_v14 = vpop.eup %1218  ;;  %1238 = vpow2.f32 %v863_v40  ;;  %v868_v40 = vld [vmem:[#allocation9 + $0xd0] sm:$0xff] }
  0xe5   : > { %v1221_v21 = vpop.eup %1220  ;;  %v752_v51 = vmul.f32 %v1219_v14, %v749_v52  ;;  %v753_v33 = vmul.f32 %v1219_v14, %v751_v10  ;;  %1240 = vpow2.f32 %v875_v37  ;;  %v832_v52 = vld [vmem:[#allocation9 + $0xb8] sm:$0xff] }
  0xe6   : > { %v1223_v11 = vpop.eup %1222  ;;  %v761_v23 = vadd.f32 %v1221_v21, %v1219_v14  ;;  %v762_v61 = vmul.f32 %v1221_v21, %v758_v47  ;;  %v764_v53 = vmul.f32 %v1221_v21, %v760_v19  ;;  %v842_v47 = vld [vmem:[#allocation9 + $0x40] sm:$0xff]  ;;  %1242 = vpow2.f32 %v887_v42 }
  0xe7   : > { %v1225_v30 = vpop.eup %1224  ;;  %v774_v7 = vmul.f32 %v1223_v11, %v770_v16  ;;  %v776_v28 = vmul.f32 %v1223_v11, %v772_v0  ;;  %v854_v0 = vld [vmem:[#allocation9 + $0x48] sm:$0xff]  ;;  %1244 = vpow2.f32 %v899_v9  ;;  %v923_v21 = vmul.f32 1.442695, %v922_v36 }
  0xe8   : > { %v763_v15 = vadd.f32 %v762_v61, %v752_v51  ;;  %v773_v57 = vadd.f32 %v1223_v11, %v761_v23  ;;  %v786_v63 = vmul.f32 %v1225_v30, %v782_v5  ;;  %v1227_v35 = vpop.eup %1226  ;;  %v765_v58 = vadd.f32 %v764_v53, %v753_v33  ;;  %v856_v23 = vld [vmem:[#allocation9 + $0xc8] sm:$0xff] }
  0xe9   : > { %v788_v17 = vmul.f32 %v1225_v30, %v784_v4  ;;  %v798_v43 = vmul.f32 %v1227_v35, %v794_v29  ;;  %v1229_v48 = vpop.eup %1228  ;;  %v800_v34 = vmul.f32 %v1227_v35, %v796_v31  ;;  %1246 = vpow2.f32 %v911_v22 }
  0xea   : > { %v775_v62 = vadd.f32 %v774_v7, %v763_v15  ;;  %v785_v41 = vadd.f32 %v1225_v30, %v773_v57  ;;  %v777_v26 = vadd.f32 %v776_v28, %v765_v58  ;;  %v810_v18 = vmul.f32 %v1229_v48, %v806_v32  ;;  %v1231_v59 = vpop.eup %1230  ;;  %v878_v15 = vld [vmem:[#allocation9 + $0x58] sm:$0xff] }
  0xeb   : > { %v812_v6 = vmul.f32 %v1229_v48, %v808_v45  ;;  %v822_v8 = vmul.f32 %v1231_v59, %v818_v20  ;;  %v1233_v10 = vpop.eup %1232  ;;  %v824_v19 = vmul.f32 %v1231_v59, %v820_v56  ;;  %1248 = vpow2.f32 %v923_v21  ;;  %v880_v32 = vld [vmem:[#allocation9 + $0xd8] sm:$0xff] }
  0xec   : > { %v787_v55 = vadd.f32 %v786_v63, %v775_v62  ;;  %v797_v50 = vadd.f32 %v1227_v35, %v785_v41  ;;  %v789_v46 = vadd.f32 %v788_v17, %v777_v26  ;;  %v834_v38 = vmul.f32 %v1233_v10, %v830_v24  ;;  %v1235_v13 = vpop.eup %1234  ;;  %v928_v21 = vld [vmem:[#allocation9 + $0xf8] sm:$0xff] }
  0xed   : > { %v836_v5 = vmul.f32 %v1233_v10, %v832_v52  ;;  %v846_v11 = vmul.f32 %v1235_v13, %v842_v47  ;;  %v1237_v61 = vpop.eup %1236  ;;  %v848_v4 = vmul.f32 %v1235_v13, %v844_v25  ;;  %v926_v25 = vld [vmem:[#allocation9 + $0x78] sm:$0xff] }
  0xee   : > { %v799_v60 = vadd.f32 %v798_v43, %v787_v55  ;;  %v809_v39 = vadd.f32 %v1229_v48, %v797_v50  ;;  %v801_v54 = vadd.f32 %v800_v34, %v789_v46  ;;  %v858_v29 = vmul.f32 %v1237_v61, %v854_v0  ;;  %v1239_v28 = vpop.eup %1238  ;;  %v892_v34 = vld [vmem:[#allocation9 + $0xe0] sm:$0xff] }
  0xef   : > { %v860_v63 = vmul.f32 %v1237_v61, %v856_v23  ;;  %v870_v35 = vmul.f32 %v1239_v28, %v866_v27  ;;  %v1241_v37 = vpop.eup %1240  ;;  %v872_v17 = vmul.f32 %v1239_v28, %v868_v40 }
  0xf0   : > { %v811_v14 = vadd.f32 %v810_v18, %v799_v60  ;;  %v821_v16 = vadd.f32 %v1231_v59, %v809_v39  ;;  %v813_v51 = vadd.f32 %v812_v6, %v801_v54  ;;  %v882_v43 = vmul.f32 %v1241_v37, %v878_v15  ;;  %v1243_v45 = vpop.eup %1242  ;;  %v902_v59 = vld [vmem:[#allocation9 + $0x68] sm:$0xff] }
  0xf1   : > { %v884_v20 = vmul.f32 %v1241_v37, %v880_v32  ;;  %v1245_v55 = vpop.eup %1244  ;;  %v894_v50 = vmul.f32 %v1243_v45, %v890_v44  ;;  %v896_v46 = vmul.f32 %v1243_v45, %v892_v34  ;;  %v904_v60 = vld [vmem:[#allocation9 + $0xe8] sm:$0xff] }
  0xf2   : > { %v823_v49 = vadd.f32 %v822_v8, %v811_v14  ;;  %v833_v33 = vadd.f32 %v1233_v10, %v821_v16  ;;  %v825_v53 = vadd.f32 %v824_v19, %v813_v51  ;;  %v906_v52 = vmul.f32 %v1245_v55, %v902_v59  ;;  %v914_v10 = vld [vmem:[#allocation9 + $0x70] sm:$0xff] }
  0xf3   : > { %v1247_v24 = vpop.eup %1246  ;;  %v908_v54 = vmul.f32 %v1245_v55, %v904_v60  ;;  %v916_v14 = vld [vmem:[#allocation9 + $0xf0] sm:$0xff] }
  0xf4   : > { %v835_v30 = vadd.f32 %v834_v38, %v823_v49  ;;  %v845_v7 = vadd.f32 %v1235_v13, %v833_v33  ;;  %v837_v57 = vadd.f32 %v836_v5, %v825_v53  ;;  %v918_v38 = vmul.f32 %v1247_v24, %v914_v10 }
  0xf5   : > { %v1249_v39 = vpop.eup %1248  ;;  %v920_v0 = vmul.f32 %v1247_v24, %v916_v14 }
  0xf6   : > { %v847_v12 = vadd.f32 %v846_v11, %v835_v30  ;;  %v857_v31 = vadd.f32 %v1237_v61, %v845_v7  ;;  %v849_v58 = vadd.f32 %v848_v4, %v837_v57  ;;  %v930_v5 = vmul.f32 %v1249_v39, %v926_v25 }
  0xf7   : > { %v932_v33 = vmul.f32 %v1249_v39, %v928_v21 }
  0xf8   : > { %v859_v62 = vadd.f32 %v858_v29, %v847_v12  ;;  %v869_v41 = vadd.f32 %v1239_v28, %v857_v31  ;;  %v861_v48 = vadd.f32 %v860_v63, %v849_v58  ;;  %v965_v58 = vstv %s1388_s3  ;;  %s94_s3 = sadd.s32 1, %s1388_s3  }
  0xf9   : > { %vm966_vm2 = vcmp.eq.s32.totalorder %v1469_v2, %v965_v58  ;;  %p91_p3 = scmp.ge.s32.totalorder %s94_s3, 8  }
  0xfa   : > { %v871_v42 = vadd.f32 %v870_v35, %v859_v62  ;;  %v881_v26 = vadd.f32 %v1241_v37, %v869_v41  ;;  %v873_v18 = vadd.f32 %v872_v17, %v861_v48  ;;  %s1397_s15 = smov (%p91_p3), [#allocation12]  }
  0xfb   :  { %s977_s16 = sshll.u32 (%p91_p3), %s1397_s15, 4  ;;  %s978_s16 = int_to_ptr.vmem [resolvable:$true] %s977_s16 }
  0xfc   : > { %v883_v36 = vadd.f32 %v882_v43, %v871_v42  ;;  %v893_v56 = vadd.f32 %v1243_v45, %v881_v26  ;;  %v885_v9 = vadd.f32 %v884_v20, %v873_v18  ;;  %s1340_s17 = scalar_lea.vmem (%p91_p3), %s978_s16, 128  ;;  %p1345_p5 = scmp.lt.s32.totalorder (%p91_p3), %s978_s16, %s978_s16 }
  0xfd   :  { %p1341_p4 = scmp.ne.s32.totalorder (%p91_p3), %s978_s16, %s1340_s17  ;;  %p1346_p6 = scmp.lt.s32.totalorder (%p91_p3), %s1340_s17, %s1340_s17 }
  0xfe   : > { %v905_v6 = vadd.f32 %v1245_v55, %v893_v56  ;;  %v895_v8 = vadd.f32 %v894_v50, %v883_v36  ;;  %v897_v22 = vadd.f32 %v896_v46, %v885_v9 }
  0xff   :  { %p1347_p7 = por (%p91_p3), %p1346_p6, %p1345_p5 }
 0x100   : > { %v917_v47 = vadd.f32 %v1247_v24, %v905_v6  ;;  %v907_v16 = vadd.f32 %v906_v52, %v895_v8  ;;  %v909_v13 = vadd.f32 %v908_v54, %v897_v22 }
 0x101   :  { %p1348_p8 = pnand (%p91_p3), %p1347_p7, %p1341_p4 }
 0x102   : > { %v929_v19 = vadd.f32 %v1249_v39, %v917_v47  ;;  %v919_v51 = vadd.f32 %v918_v38, %v907_v16  ;;  %v921_v49 = vadd.f32 %v920_v0, %v909_v13 }
 0x104   : > { %1250 = vrcp.f32 %v929_v19  ;;  %v931_v11 = vadd.f32 %v930_v5, %v919_v51  ;;  %v933_v23 = vadd.f32 %v932_v33, %v921_v49 }
 0x10e   : > { %v1251_v61 = vpop.eup %1250 }
 0x10f   : > { %v935_v27 = vmul.f32 %v1251_v61, %v931_v11  ;;  %v947_v53 = vmul.f32 %v1251_v61, %v933_v23 }
 0x111   : > { %936 = vadd.xlane.f32.xlu0 %v935_v27 }
 0x115   : > { %948 = vadd.xlane.f32.xlu0 %v947_v53 }
 0x19e   : > { %v937_v4 = vpop.xlane.xlu0 %936 }
 0x19f   : > { %v938_v30 = vrot.slane %v937_v4, 4 }
 0x1a1   : > { %v939_v7 = vadd.f32 %v938_v30, %v937_v4 }
 0x1a2   : > { %v949_v29 = vpop.xlane.xlu0 %948 }
 0x1a3   : > { %v940_v40 = vrot.slane %v939_v7, 2  ;;  %v950_v28 = vrot.slane %v949_v29, 4 }
 0x1a5   : > { %v941_v15 = vadd.f32 %v940_v40, %v939_v7  ;;  %v951_v57 = vadd.f32 %v950_v28, %v949_v29 }
 0x1a7   : > { %v942_v63 = vrot.slane %v941_v15, 1  ;;  %v952_v12 = vrot.slane %v951_v57, 2 }
 0x1a9   : > { %v943_v31 = vadd.f32 %v942_v63, %v941_v15  ;;  %v953_v35 = vadd.f32 %v952_v12, %v951_v57 }
 0x1ab   : > { %1190 = vpush %v943_v31  ;;  %v954_v32 = vrot.slane %v953_v35, 1 }
 0x1ad   : > { %v955_v37 = vadd.f32 %v954_v32, %v953_v35 }
 0x1af   : > { %1192 = vpush %v955_v37 }
 0x1dc   : > { %s1191_s28 = spop %1190 }
 0x1dd   : > { %s946_s2 = sadd.f32 %s1191_s28, %s945_s10 }
 0x1df   : > { %v963_v41 = vstv %s946_s2 }
 0x1e0   : > { %s1193_s13 = spop %1192 }
 0x1e1   : > { %s958_s14 = sadd.f32 %s1193_s13, %s1189_s18  ;;  %93 = sbr.rel (!%p91_p3) target bundleno = 81 (0x51), region = 107 }
 0x1e3   : > { %v961_v17 = vstv %s958_s14 }
 0x1e4   : > { %v962_v62 = vsel %vm960_vm0, %v961_v17, 0.0 }
 0x1e5   : > { %v964_v43 = vsel %vm959_vm1, %v963_v41, %v962_v62 }
 0x1e6   : > { %v969_v44 = vsel %vm966_vm2, %v964_v43, %v1384_v3  }
 0x1e7   : > { %v2264_v3 = vmov %v969_v44  ;;  %970 = vst [vmem:[#allocation12] sm:$0xff] (%p91_p3), %v969_v44 }
 0x1e8   :  { %1351 = shalt.err (!%p1348_p8)
}
 0x1e9   :  { %s1352_s20 = scalar_lea.hbm %s2263_s5, 128 }
 0x1ea   :  { %p1353_p9 = scmp.ne.s32.totalorder %s2263_s5, %s1352_s20  ;;  %p1356_p10 = scmp.lt.u32.totalorder %s1352_s20, %s2263_s5 }
 0x1ec   :  { %p1358_p11 = pnand %p1356_p10, %p1353_p9 }
 0x1ee   :  { %1361 = shalt.err (!%p1358_p11)
}
 0x1ef   :  { %980 = dma.vmem_to_hbm [thread:$0]  %s978_s16, 128, %s2263_s5, [#allocation4]  }
 0x1f0   :  { %1380 = dma.done.wait [#allocation4], 128  }
 0x1f1   :  { %1381 = vsyncadd [#allocation4], 4294967168 }
 0x1f2   :  { %984 = vsyncpa [#allocation3], 1 }
 0x1f3   :  { %985 = vsyncpa [#allocation10], 1 }
 0x1f4   :  { %986 = vsyncpa [#allocation4], 1 }
 0x1f5   :  { %987 = vsyncpa [#allocation5], 1 }
 0x1f6   :  { %988 = vsyncpa [#allocation8], 1 }

</bundles_post_ra>
